<compile_context>
chip_gen: v7x
topology: tpu7x:2x2x1
jax: 0.10.0
libtpu: 0.0.40
codegen_flags: <defaults>
</compile_context>

<pallas_src>
import jax
import jax.numpy as jnp
from jax import lax
from jax.experimental import pallas as pl
from jax.experimental.pallas import tpu as pltpu

EMBED = 63            # input_dim / d_model
HEADS = 3             # num_heads
HEAD_DIM = EMBED // HEADS
FFN = 2048            # PyTorch default dim_feedforward
FFN_TILE = 512        # grid tile over the FFN dimension
NUM_CLASSES = 4
OUT_PAD = 128         # lane-dense padded output width
EPS = 1e-5


def _layernorm(x, gamma, beta):
    # one-pass mean / E[x^2] form (halves the dependent cross-lane reductions)
    mean = jnp.mean(x, axis=-1, keepdims=True)
    mean_sq = jnp.mean(x * x, axis=-1, keepdims=True)
    var = mean_sq - mean * mean
    return (x - mean) * lax.rsqrt(var + EPS) * gamma + beta


def _encoder_classifier_kernel(
    xs_ref,                                   # (S, E) f32 — last batch column
    wqkv_ref, bqkv_ref,                       # (3H, E, Dh), (3H, 1, Dh) f32
    wo_ref, bo_ref,                           # (H, Dh, E), (1, E) f32
    g1_ref, be1_ref,                          # (1, E) f32
    w1_ref, b1_ref,                           # (E, TF) bf16, (1, TF) f32
    w2_ref, b2_ref,                           # (TF, E) bf16, (1, E) f32
    g2_ref, be2_ref,                          # (1, E) f32
    fcw_ref, fcb_ref,                         # (E, 128), (1, 128) f32 (padded)
    out_ref,                                  # (S, 128) f32
    x1_ref, acc_ref,                          # VMEM scratch (S, E) f32
):
    k = pl.program_id(0)

    # ---- step 0: self-attention + residual + layernorm1 -------------------
    @pl.when(k == 0)
    def _attention():
        xs = xs_ref[...]                      # (S, E)
        S = xs.shape[0]
        scale = HEAD_DIM ** -0.5
        attn = jnp.zeros((S, EMBED), jnp.float32)
        for h in range(HEADS):                # static loop, 3 heads
            q = jnp.dot(xs, wqkv_ref[h],
                        preferred_element_type=jnp.float32) + bqkv_ref[h]
            kk = jnp.dot(xs, wqkv_ref[HEADS + h],
                         preferred_element_type=jnp.float32) + bqkv_ref[HEADS + h]
            v = jnp.dot(xs, wqkv_ref[2 * HEADS + h],
                        preferred_element_type=jnp.float32) + bqkv_ref[2 * HEADS + h]
            # scores = (q * scale) @ kk.T without explicit transpose
            s = lax.dot_general(q * scale, kk, (((1,), (1,)), ((), ())),
                                preferred_element_type=jnp.float32)   # (S, S)
            s = s - jnp.max(s, axis=-1, keepdims=True)
            p = jnp.exp(s)
            p = p * pl.reciprocal(jnp.sum(p, axis=-1, keepdims=True), approx=True)
            o = jnp.dot(p, v, preferred_element_type=jnp.float32)     # (S, Dh)
            # per-head output projection: leading-axis weight index, MXU accumulate
            attn = attn + jnp.dot(o, wo_ref[h],
                                  preferred_element_type=jnp.float32)  # (S, E)
        attn = attn + bo_ref[...]
        x1_ref[...] = _layernorm(xs + attn, g1_ref[...], be1_ref[...])
        acc_ref[...] = jnp.zeros_like(acc_ref)

    # ---- every step: one FFN_TILE slab of the feed-forward -----------------
    x1 = x1_ref[...]                                           # (S, E) f32
    h1 = jnp.dot(x1.astype(jnp.bfloat16), w1_ref[...],
                 preferred_element_type=jnp.float32) + b1_ref[...]   # (S, TF)
    h1 = jnp.maximum(h1, 0.0)
    acc_ref[...] += jnp.dot(h1.astype(jnp.bfloat16), w2_ref[...],
                            preferred_element_type=jnp.float32)      # (S, E)

    # ---- last step: residual + layernorm2 + classifier head ----------------
    @pl.when(k == pl.num_programs(0) - 1)
    def _finalize():
        x2 = _layernorm(x1 + acc_ref[...] + b2_ref[...],
                        g2_ref[...], be2_ref[...])             # (S, E)
        out_ref[...] = jnp.dot(x2, fcw_ref[...],
                               preferred_element_type=jnp.float32) + fcb_ref[...]


def transformer_classifier_forward(x, kp):
    """x: (S, B, E) f32, kp: packed kernel params. Returns (S, NUM_CLASSES)."""
    S, B, E = x.shape
    assert E == EMBED
    xs = x[:, -1, :]                     # only this column is ever used by fc
    n_steps = FFN // FFN_TILE

    def _full(shape):
        nd = len(shape)
        return pl.BlockSpec(shape, lambda k, _nd=nd: (0,) * _nd)

    in_specs = [
        _full((S, EMBED)),                                     # xs
        _full((3 * HEADS, EMBED, HEAD_DIM)),                   # wqkv
        _full((3 * HEADS, 1, HEAD_DIM)),                       # bqkv
        _full((HEADS, HEAD_DIM, EMBED)),                       # wo
        _full((1, EMBED)),                                     # bo
        _full((1, EMBED)), _full((1, EMBED)),                  # g1, be1
        pl.BlockSpec((EMBED, FFN_TILE), lambda k: (0, k)),     # w1 (bf16)
        pl.BlockSpec((1, FFN_TILE), lambda k: (0, k)),         # b1
        pl.BlockSpec((FFN_TILE, EMBED), lambda k: (k, 0)),     # w2 (bf16)
        _full((1, EMBED)),                                     # b2
        _full((1, EMBED)), _full((1, EMBED)),                  # g2, be2
        _full((EMBED, OUT_PAD)), _full((1, OUT_PAD)),          # fcw, fcb (padded)
    ]

    out = pl.pallas_call(
        _encoder_classifier_kernel,
        out_shape=jax.ShapeDtypeStruct((S, OUT_PAD), jnp.float32),
        grid_spec=pltpu.PrefetchScalarGridSpec(
            num_scalar_prefetch=0,
            grid=(n_steps,),
            in_specs=in_specs,
            out_specs=pl.BlockSpec((S, OUT_PAD), lambda k: (0, 0)),
            scratch_shapes=[pltpu.VMEM((S, EMBED), jnp.float32),   # x1
                            pltpu.VMEM((S, EMBED), jnp.float32)],  # FFN acc
        ),
        compiler_params=pltpu.CompilerParams(
            dimension_semantics=("arbitrary",)),
    )(xs, kp["wqkv"], kp["bqkv"], kp["wo"], kp["bo"], kp["g1"], kp["be1"],
      kp["w1"], kp["b1"], kp["w2"], kp["b2"], kp["g2"], kp["be2"],
      kp["fcw"], kp["fcb"])
    return out[:, :NUM_CLASSES]


# ----------------------------- host-side glue --------------------------------

def init_raw_params(key):
    """PyTorch-shaped parameters (f32)."""
    ks = jax.random.split(key, 10)

    def w(k, shape, s=0.05):
        return (s * jax.random.normal(k, shape)).astype(jnp.float32)

    E, C = EMBED, NUM_CLASSES
    return dict(
        in_proj_w=w(ks[0], (3 * E, E)),
        in_proj_b=w(ks[1], (3 * E,), 0.02),
        out_proj_w=w(ks[2], (E, E)),
        out_proj_b=w(ks[3], (E,), 0.02),
        lin1_w=w(ks[4], (FFN, E)),
        lin1_b=w(ks[5], (FFN,), 0.02),
        lin2_w=w(ks[6], (E, FFN)),
        lin2_b=w(ks[7], (E,), 0.02),
        ln1_g=jnp.ones((E,), jnp.float32), ln1_b=jnp.zeros((E,), jnp.float32),
        ln2_g=jnp.ones((E,), jnp.float32), ln2_b=jnp.zeros((E,), jnp.float32),
        fc_w=w(ks[8], (C, E)),
        fc_b=w(ks[9], (C,), 0.02),
    )


def pack_params(raw):
    """Repack PyTorch-shaped params into the kernel layout (head-major,
    pre-transposed, bf16 FFN weights, lane-padded classifier head)."""
    E, H, Dh = EMBED, HEADS, HEAD_DIM
    wq, wk, wv = (raw["in_proj_w"][0:E], raw["in_proj_w"][E:2 * E],
                  raw["in_proj_w"][2 * E:3 * E])
    bq, bk, bv = (raw["in_proj_b"][0:E], raw["in_proj_b"][E:2 * E],
                  raw["in_proj_b"][2 * E:3 * E])

    def head_major(w_):   # (E_out, E_in) -> (H, E_in, Dh) so q_h = x @ w[h]
        return w_.T.reshape(E, H, Dh).transpose(1, 0, 2)

    wqkv = jnp.concatenate(
        [head_major(wq), head_major(wk), head_major(wv)], axis=0)       # (3H,E,Dh)
    bqkv = jnp.concatenate(
        [bq.reshape(H, 1, Dh), bk.reshape(H, 1, Dh), bv.reshape(H, 1, Dh)],
        axis=0)                                                         # (3H,1,Dh)
    wo = raw["out_proj_w"].T.reshape(H, Dh, E)                          # (H,Dh,E)

    fcw = jnp.zeros((E, OUT_PAD), jnp.float32).at[:, :NUM_CLASSES].set(
        raw["fc_w"].T)
    fcb = jnp.zeros((1, OUT_PAD), jnp.float32).at[0, :NUM_CLASSES].set(
        raw["fc_b"])

    return dict(
        wqkv=wqkv.astype(jnp.float32),
        bqkv=bqkv.astype(jnp.float32),
        wo=wo.astype(jnp.float32),
        bo=raw["out_proj_b"].reshape(1, E),
        g1=raw["ln1_g"].reshape(1, E), be1=raw["ln1_b"].reshape(1, E),
        w1=raw["lin1_w"].T.astype(jnp.bfloat16),        # (E, FFN) bf16
        b1=raw["lin1_b"].reshape(1, FFN),
        w2=raw["lin2_w"].T.astype(jnp.bfloat16),        # (FFN, E) bf16
        b2=raw["lin2_b"].reshape(1, E),
        g2=raw["ln2_g"].reshape(1, E), be2=raw["ln2_b"].reshape(1, E),
        fcw=fcw, fcb=fcb,
    )


def reference_forward(x, raw):
    """Pure-JAX f32 reference mirroring the PyTorch forward pass."""
    E, H, Dh = EMBED, HEADS, HEAD_DIM
    xs = x[:, -1, :]                                          # (S, E)
    S = xs.shape[0]
    wq, wk, wv = (raw["in_proj_w"][0:E], raw["in_proj_w"][E:2 * E],
                  raw["in_proj_w"][2 * E:3 * E])
    bq, bk, bv = (raw["in_proj_b"][0:E], raw["in_proj_b"][E:2 * E],
                  raw["in_proj_b"][2 * E:3 * E])
    q = xs @ wq.T + bq
    k = xs @ wk.T + bk
    v = xs @ wv.T + bv
    qh = q.reshape(S, H, Dh).transpose(1, 0, 2)
    kh = k.reshape(S, H, Dh).transpose(1, 0, 2)
    vh = v.reshape(S, H, Dh).transpose(1, 0, 2)
    s = jnp.einsum("hqd,hkd->hqk", qh, kh) / jnp.sqrt(jnp.float32(Dh))
    p = jax.nn.softmax(s, axis=-1)
    o = jnp.einsum("hqk,hkd->hqd", p, vh).transpose(1, 0, 2).reshape(S, E)
    attn = o @ raw["out_proj_w"].T + raw["out_proj_b"]

    def ln(y, g, b):
        m = y.mean(-1, keepdims=True)
        var = ((y - m) ** 2).mean(-1, keepdims=True)
        return (y - m) / jnp.sqrt(var + EPS) * g + b

    x1 = ln(xs + attn, raw["ln1_g"], raw["ln1_b"])
    h1 = jax.nn.relu(x1 @ raw["lin1_w"].T + raw["lin1_b"])
    h2 = h1 @ raw["lin2_w"].T + raw["lin2_b"]
    x2 = ln(x1 + h2, raw["ln2_g"], raw["ln2_b"])
    return x2 @ raw["fc_w"].T + raw["fc_b"]


if __name__ == "__main__":
    key = jax.random.PRNGKey(0)
    kx, kw = jax.random.split(key)
    S, B = 8, 2                      # (seq, batch) — small shapes
    x = jax.random.normal(kx, (S, B, EMBED), dtype=jnp.float32)
    raw = init_raw_params(kw)
    packed = pack_params(raw)

    out = transformer_classifier_forward(x, packed)
    out = jax.block_until_ready(out)
    assert out.shape == (S, NUM_CLASSES) and out.dtype == jnp.float32

    ref = reference_forward(x, raw)
    err = float(jnp.max(jnp.abs(out - ref)))
    assert err < 5e-2, f"kernel/reference mismatch: max abs err {err}"
    print("KERNEL_OK")
</pallas_src>

<mosaic_0001>
module attributes {stable_mosaic.version = 11 : i64} {
  func.func @_encoder_classifier_kernel(%arg0: i32, %arg1: memref<8x63xf32, #tpu.memory_space<vmem>>, %arg2: memref<9x63x21xf32, #tpu.memory_space<vmem>>, %arg3: memref<9x1x21xf32, #tpu.memory_space<vmem>>, %arg4: memref<3x21x63xf32, #tpu.memory_space<vmem>>, %arg5: memref<1x63xf32, #tpu.memory_space<vmem>>, %arg6: memref<1x63xf32, #tpu.memory_space<vmem>>, %arg7: memref<1x63xf32, #tpu.memory_space<vmem>>, %arg8: memref<63x512xbf16, #tpu.memory_space<vmem>>, %arg9: memref<1x512xf32, #tpu.memory_space<vmem>>, %arg10: memref<512x63xbf16, #tpu.memory_space<vmem>>, %arg11: memref<1x63xf32, #tpu.memory_space<vmem>>, %arg12: memref<1x63xf32, #tpu.memory_space<vmem>>, %arg13: memref<1x63xf32, #tpu.memory_space<vmem>>, %arg14: memref<63x128xf32, #tpu.memory_space<vmem>>, %arg15: memref<1x128xf32, #tpu.memory_space<vmem>>, %arg16: memref<8x128xf32, #tpu.memory_space<vmem>>, %arg17: memref<8x63xf32, #tpu.memory_space<vmem>>, %arg18: memref<8x63xf32, #tpu.memory_space<vmem>>) attributes {dimension_semantics = [#tpu.dimension_semantics<arbitrary>], iteration_bounds = array<i64: 4>, scalar_prefetch = 0 : i64, scratch_operands = 2 : i64, tpu.core_type = #tpu.core_type<tc>, window_params = [{pipeline_mode = #tpu.pipeline_mode<synchronous>, transform_indices = @transform_0, window_bounds = array<i64: 8, 63>}, {pipeline_mode = #tpu.pipeline_mode<synchronous>, transform_indices = @transform_1, window_bounds = array<i64: 9, 63, 21>}, {pipeline_mode = #tpu.pipeline_mode<synchronous>, transform_indices = @transform_2, window_bounds = array<i64: 9, 1, 21>}, {pipeline_mode = #tpu.pipeline_mode<synchronous>, transform_indices = @transform_3, window_bounds = array<i64: 3, 21, 63>}, {pipeline_mode = #tpu.pipeline_mode<synchronous>, transform_indices = @transform_4, window_bounds = array<i64: 1, 63>}, {pipeline_mode = #tpu.pipeline_mode<synchronous>, transform_indices = @transform_5, window_bounds = array<i64: 1, 63>}, {pipeline_mode = #tpu.pipeline_mode<synchronous>, transform_indices = @transform_6, window_bounds = array<i64: 1, 63>}, {transform_indices = @transform_7, window_bounds = array<i64: 63, 512>}, {transform_indices = @transform_8, window_bounds = array<i64: 1, 512>}, {transform_indices = @transform_9, window_bounds = array<i64: 512, 63>}, {pipeline_mode = #tpu.pipeline_mode<synchronous>, transform_indices = @transform_10, window_bounds = array<i64: 1, 63>}, {pipeline_mode = #tpu.pipeline_mode<synchronous>, transform_indices = @transform_11, window_bounds = array<i64: 1, 63>}, {pipeline_mode = #tpu.pipeline_mode<synchronous>, transform_indices = @transform_12, window_bounds = array<i64: 1, 63>}, {pipeline_mode = #tpu.pipeline_mode<synchronous>, transform_indices = @transform_13, window_bounds = array<i64: 63, 128>}, {pipeline_mode = #tpu.pipeline_mode<synchronous>, transform_indices = @transform_14, window_bounds = array<i64: 1, 128>}, {pipeline_mode = #tpu.pipeline_mode<synchronous>, transform_indices = @transform_15, window_bounds = array<i64: 8, 128>}]} {
    %c0_i32 = arith.constant 0 : i32
    %0 = arith.cmpi eq, %arg0, %c0_i32 : i32
    %1 = arith.extui %0 : i1 to i32
    %c0_i32_0 = arith.constant 0 : i32
    %2 = arith.cmpi ne, %1, %c0_i32_0 : i32
    scf.if %2 {
      %c0_15 = arith.constant 0 : index
      %c0_16 = arith.constant 0 : index
      %21 = vector.load %arg1[%c0_15, %c0_16] : memref<8x63xf32, #tpu.memory_space<vmem>>, vector<8x63xf32>
      %cst_17 = arith.constant 0.000000e+00 : f32
      %22 = vector.broadcast %cst_17 : f32 to vector<8x63xf32>
      %c0_18 = arith.constant 0 : index
      %c0_19 = arith.constant 0 : index
      %c0_20 = arith.constant 0 : index
      %23 = vector.load %arg2[%c0_18, %c0_19, %c0_20] : memref<9x63x21xf32, #tpu.memory_space<vmem>>, vector<1x63x21xf32>
      %24 = vector.shape_cast %23 : vector<1x63x21xf32> to vector<63x21xf32>
      %cst_21 = arith.constant dense<0.000000e+00> : vector<8x21xf32>
      %25 = tpu.matmul %21, %24, %cst_21 {dimension_numbers = #tpu.dot_dimension_numbers<[1], [0], [0], [1], [0, 0, 1, 1], [], []>} : vector<8x63xf32>, vector<63x21xf32>, vector<8x21xf32> -> vector<8x21xf32>
      %c0_22 = arith.constant 0 : index
      %c0_23 = arith.constant 0 : index
      %c0_24 = arith.constant 0 : index
      %26 = vector.load %arg3[%c0_22, %c0_23, %c0_24] : memref<9x1x21xf32, #tpu.memory_space<vmem>>, vector<1x1x21xf32>
      %27 = vector.shape_cast %26 : vector<1x1x21xf32> to vector<1x21xf32>
      %28 = vector.broadcast %27 : vector<1x21xf32> to vector<8x21xf32>
      %29 = arith.addf %25, %28 : vector<8x21xf32>
      %c3 = arith.constant 3 : index
      %c0_25 = arith.constant 0 : index
      %c0_26 = arith.constant 0 : index
      %30 = vector.load %arg2[%c3, %c0_25, %c0_26] : memref<9x63x21xf32, #tpu.memory_space<vmem>>, vector<1x63x21xf32>
      %31 = vector.shape_cast %30 : vector<1x63x21xf32> to vector<63x21xf32>
      %cst_27 = arith.constant dense<0.000000e+00> : vector<8x21xf32>
      %32 = tpu.matmul %21, %31, %cst_27 {dimension_numbers = #tpu.dot_dimension_numbers<[1], [0], [0], [1], [0, 0, 1, 1], [], []>} : vector<8x63xf32>, vector<63x21xf32>, vector<8x21xf32> -> vector<8x21xf32>
      %c3_28 = arith.constant 3 : index
      %c0_29 = arith.constant 0 : index
      %c0_30 = arith.constant 0 : index
      %33 = vector.load %arg3[%c3_28, %c0_29, %c0_30] : memref<9x1x21xf32, #tpu.memory_space<vmem>>, vector<1x1x21xf32>
      %34 = vector.shape_cast %33 : vector<1x1x21xf32> to vector<1x21xf32>
      %35 = vector.broadcast %34 : vector<1x21xf32> to vector<8x21xf32>
      %36 = arith.addf %32, %35 : vector<8x21xf32>
      %c6 = arith.constant 6 : index
      %c0_31 = arith.constant 0 : index
      %c0_32 = arith.constant 0 : index
      %37 = vector.load %arg2[%c6, %c0_31, %c0_32] : memref<9x63x21xf32, #tpu.memory_space<vmem>>, vector<1x63x21xf32>
      %38 = vector.shape_cast %37 : vector<1x63x21xf32> to vector<63x21xf32>
      %cst_33 = arith.constant dense<0.000000e+00> : vector<8x21xf32>
      %39 = tpu.matmul %21, %38, %cst_33 {dimension_numbers = #tpu.dot_dimension_numbers<[1], [0], [0], [1], [0, 0, 1, 1], [], []>} : vector<8x63xf32>, vector<63x21xf32>, vector<8x21xf32> -> vector<8x21xf32>
      %c6_34 = arith.constant 6 : index
      %c0_35 = arith.constant 0 : index
      %c0_36 = arith.constant 0 : index
      %40 = vector.load %arg3[%c6_34, %c0_35, %c0_36] : memref<9x1x21xf32, #tpu.memory_space<vmem>>, vector<1x1x21xf32>
      %41 = vector.shape_cast %40 : vector<1x1x21xf32> to vector<1x21xf32>
      %42 = vector.broadcast %41 : vector<1x21xf32> to vector<8x21xf32>
      %43 = arith.addf %39, %42 : vector<8x21xf32>
      %cst_37 = arith.constant 0.218217894 : f32
      %44 = vector.broadcast %cst_37 : f32 to vector<8x21xf32>
      %45 = arith.mulf %29, %44 : vector<8x21xf32>
      %cst_38 = arith.constant dense<0.000000e+00> : vector<8x8xf32>
      %46 = tpu.matmul %45, %36, %cst_38 {dimension_numbers = #tpu.dot_dimension_numbers<[1], [1], [0], [0], [0, 0, 1, 0], [], []>} : vector<8x21xf32>, vector<8x21xf32>, vector<8x8xf32> -> vector<8x8xf32>
      %cst_39 = arith.constant dense<0xFF800000> : vector<8xf32>
      %47 = vector.multi_reduction <maximumf>, %46, %cst_39 [1] : vector<8x8xf32> to vector<8xf32>
      %48 = vector.shape_cast %47 : vector<8xf32> to vector<8x1xf32>
      %49 = vector.broadcast %48 : vector<8x1xf32> to vector<8x8xf32>
      %50 = arith.subf %46, %49 : vector<8x8xf32>
      %51 = math.exp %50 : vector<8x8xf32>
      %cst_40 = arith.constant dense<0.000000e+00> : vector<8xf32>
      %52 = vector.multi_reduction <add>, %51, %cst_40 [1] : vector<8x8xf32> to vector<8xf32>
      %53 = vector.shape_cast %52 : vector<8xf32> to vector<8x1xf32>
      %54 = tpu.reciprocal %53 {approx = true} : vector<8x1xf32> -> vector<8x1xf32>
      %55 = vector.broadcast %54 : vector<8x1xf32> to vector<8x8xf32>
      %56 = arith.mulf %51, %55 : vector<8x8xf32>
      %cst_41 = arith.constant dense<0.000000e+00> : vector<8x21xf32>
      %57 = tpu.matmul %56, %43, %cst_41 {dimension_numbers = #tpu.dot_dimension_numbers<[1], [0], [0], [1], [0, 0, 1, 1], [], []>} : vector<8x8xf32>, vector<8x21xf32>, vector<8x21xf32> -> vector<8x21xf32>
      %c0_42 = arith.constant 0 : index
      %c0_43 = arith.constant 0 : index
      %c0_44 = arith.constant 0 : index
      %58 = vector.load %arg4[%c0_42, %c0_43, %c0_44] : memref<3x21x63xf32, #tpu.memory_space<vmem>>, vector<1x21x63xf32>
      %59 = vector.shape_cast %58 : vector<1x21x63xf32> to vector<21x63xf32>
      %cst_45 = arith.constant dense<0.000000e+00> : vector<8x63xf32>
      %60 = tpu.matmul %57, %59, %cst_45 {dimension_numbers = #tpu.dot_dimension_numbers<[1], [0], [0], [1], [0, 0, 1, 1], [], []>} : vector<8x21xf32>, vector<21x63xf32>, vector<8x63xf32> -> vector<8x63xf32>
      %61 = arith.addf %22, %60 : vector<8x63xf32>
      %c1 = arith.constant 1 : index
      %c0_46 = arith.constant 0 : index
      %c0_47 = arith.constant 0 : index
      %62 = vector.load %arg2[%c1, %c0_46, %c0_47] : memref<9x63x21xf32, #tpu.memory_space<vmem>>, vector<1x63x21xf32>
      %63 = vector.shape_cast %62 : vector<1x63x21xf32> to vector<63x21xf32>
      %cst_48 = arith.constant dense<0.000000e+00> : vector<8x21xf32>
      %64 = tpu.matmul %21, %63, %cst_48 {dimension_numbers = #tpu.dot_dimension_numbers<[1], [0], [0], [1], [0, 0, 1, 1], [], []>} : vector<8x63xf32>, vector<63x21xf32>, vector<8x21xf32> -> vector<8x21xf32>
      %c1_49 = arith.constant 1 : index
      %c0_50 = arith.constant 0 : index
      %c0_51 = arith.constant 0 : index
      %65 = vector.load %arg3[%c1_49, %c0_50, %c0_51] : memref<9x1x21xf32, #tpu.memory_space<vmem>>, vector<1x1x21xf32>
      %66 = vector.shape_cast %65 : vector<1x1x21xf32> to vector<1x21xf32>
      %67 = vector.broadcast %66 : vector<1x21xf32> to vector<8x21xf32>
      %68 = arith.addf %64, %67 : vector<8x21xf32>
      %c4 = arith.constant 4 : index
      %c0_52 = arith.constant 0 : index
      %c0_53 = arith.constant 0 : index
      %69 = vector.load %arg2[%c4, %c0_52, %c0_53] : memref<9x63x21xf32, #tpu.memory_space<vmem>>, vector<1x63x21xf32>
      %70 = vector.shape_cast %69 : vector<1x63x21xf32> to vector<63x21xf32>
      %cst_54 = arith.constant dense<0.000000e+00> : vector<8x21xf32>
      %71 = tpu.matmul %21, %70, %cst_54 {dimension_numbers = #tpu.dot_dimension_numbers<[1], [0], [0], [1], [0, 0, 1, 1], [], []>} : vector<8x63xf32>, vector<63x21xf32>, vector<8x21xf32> -> vector<8x21xf32>
      %c4_55 = arith.constant 4 : index
      %c0_56 = arith.constant 0 : index
      %c0_57 = arith.constant 0 : index
      %72 = vector.load %arg3[%c4_55, %c0_56, %c0_57] : memref<9x1x21xf32, #tpu.memory_space<vmem>>, vector<1x1x21xf32>
      %73 = vector.shape_cast %72 : vector<1x1x21xf32> to vector<1x21xf32>
      %74 = vector.broadcast %73 : vector<1x21xf32> to vector<8x21xf32>
      %75 = arith.addf %71, %74 : vector<8x21xf32>
      %c7 = arith.constant 7 : index
      %c0_58 = arith.constant 0 : index
      %c0_59 = arith.constant 0 : index
      %76 = vector.load %arg2[%c7, %c0_58, %c0_59] : memref<9x63x21xf32, #tpu.memory_space<vmem>>, vector<1x63x21xf32>
      %77 = vector.shape_cast %76 : vector<1x63x21xf32> to vector<63x21xf32>
      %cst_60 = arith.constant dense<0.000000e+00> : vector<8x21xf32>
      %78 = tpu.matmul %21, %77, %cst_60 {dimension_numbers = #tpu.dot_dimension_numbers<[1], [0], [0], [1], [0, 0, 1, 1], [], []>} : vector<8x63xf32>, vector<63x21xf32>, vector<8x21xf32> -> vector<8x21xf32>
      %c7_61 = arith.constant 7 : index
      %c0_62 = arith.constant 0 : index
      %c0_63 = arith.constant 0 : index
      %79 = vector.load %arg3[%c7_61, %c0_62, %c0_63] : memref<9x1x21xf32, #tpu.memory_space<vmem>>, vector<1x1x21xf32>
      %80 = vector.shape_cast %79 : vector<1x1x21xf32> to vector<1x21xf32>
      %81 = vector.broadcast %80 : vector<1x21xf32> to vector<8x21xf32>
      %82 = arith.addf %78, %81 : vector<8x21xf32>
      %cst_64 = arith.constant 0.218217894 : f32
      %83 = vector.broadcast %cst_64 : f32 to vector<8x21xf32>
      %84 = arith.mulf %68, %83 : vector<8x21xf32>
      %cst_65 = arith.constant dense<0.000000e+00> : vector<8x8xf32>
      %85 = tpu.matmul %84, %75, %cst_65 {dimension_numbers = #tpu.dot_dimension_numbers<[1], [1], [0], [0], [0, 0, 1, 0], [], []>} : vector<8x21xf32>, vector<8x21xf32>, vector<8x8xf32> -> vector<8x8xf32>
      %cst_66 = arith.constant dense<0xFF800000> : vector<8xf32>
      %86 = vector.multi_reduction <maximumf>, %85, %cst_66 [1] : vector<8x8xf32> to vector<8xf32>
      %87 = vector.shape_cast %86 : vector<8xf32> to vector<8x1xf32>
      %88 = vector.broadcast %87 : vector<8x1xf32> to vector<8x8xf32>
      %89 = arith.subf %85, %88 : vector<8x8xf32>
      %90 = math.exp %89 : vector<8x8xf32>
      %cst_67 = arith.constant dense<0.000000e+00> : vector<8xf32>
      %91 = vector.multi_reduction <add>, %90, %cst_67 [1] : vector<8x8xf32> to vector<8xf32>
      %92 = vector.shape_cast %91 : vector<8xf32> to vector<8x1xf32>
      %93 = tpu.reciprocal %92 {approx = true} : vector<8x1xf32> -> vector<8x1xf32>
      %94 = vector.broadcast %93 : vector<8x1xf32> to vector<8x8xf32>
      %95 = arith.mulf %90, %94 : vector<8x8xf32>
      %cst_68 = arith.constant dense<0.000000e+00> : vector<8x21xf32>
      %96 = tpu.matmul %95, %82, %cst_68 {dimension_numbers = #tpu.dot_dimension_numbers<[1], [0], [0], [1], [0, 0, 1, 1], [], []>} : vector<8x8xf32>, vector<8x21xf32>, vector<8x21xf32> -> vector<8x21xf32>
      %c1_69 = arith.constant 1 : index
      %c0_70 = arith.constant 0 : index
      %c0_71 = arith.constant 0 : index
      %97 = vector.load %arg4[%c1_69, %c0_70, %c0_71] : memref<3x21x63xf32, #tpu.memory_space<vmem>>, vector<1x21x63xf32>
      %98 = vector.shape_cast %97 : vector<1x21x63xf32> to vector<21x63xf32>
      %cst_72 = arith.constant dense<0.000000e+00> : vector<8x63xf32>
      %99 = tpu.matmul %96, %98, %cst_72 {dimension_numbers = #tpu.dot_dimension_numbers<[1], [0], [0], [1], [0, 0, 1, 1], [], []>} : vector<8x21xf32>, vector<21x63xf32>, vector<8x63xf32> -> vector<8x63xf32>
      %100 = arith.addf %61, %99 : vector<8x63xf32>
      %c2 = arith.constant 2 : index
      %c0_73 = arith.constant 0 : index
      %c0_74 = arith.constant 0 : index
      %101 = vector.load %arg2[%c2, %c0_73, %c0_74] : memref<9x63x21xf32, #tpu.memory_space<vmem>>, vector<1x63x21xf32>
      %102 = vector.shape_cast %101 : vector<1x63x21xf32> to vector<63x21xf32>
      %cst_75 = arith.constant dense<0.000000e+00> : vector<8x21xf32>
      %103 = tpu.matmul %21, %102, %cst_75 {dimension_numbers = #tpu.dot_dimension_numbers<[1], [0], [0], [1], [0, 0, 1, 1], [], []>} : vector<8x63xf32>, vector<63x21xf32>, vector<8x21xf32> -> vector<8x21xf32>
      %c2_76 = arith.constant 2 : index
      %c0_77 = arith.constant 0 : index
      %c0_78 = arith.constant 0 : index
      %104 = vector.load %arg3[%c2_76, %c0_77, %c0_78] : memref<9x1x21xf32, #tpu.memory_space<vmem>>, vector<1x1x21xf32>
      %105 = vector.shape_cast %104 : vector<1x1x21xf32> to vector<1x21xf32>
      %106 = vector.broadcast %105 : vector<1x21xf32> to vector<8x21xf32>
      %107 = arith.addf %103, %106 : vector<8x21xf32>
      %c5 = arith.constant 5 : index
      %c0_79 = arith.constant 0 : index
      %c0_80 = arith.constant 0 : index
      %108 = vector.load %arg2[%c5, %c0_79, %c0_80] : memref<9x63x21xf32, #tpu.memory_space<vmem>>, vector<1x63x21xf32>
      %109 = vector.shape_cast %108 : vector<1x63x21xf32> to vector<63x21xf32>
      %cst_81 = arith.constant dense<0.000000e+00> : vector<8x21xf32>
      %110 = tpu.matmul %21, %109, %cst_81 {dimension_numbers = #tpu.dot_dimension_numbers<[1], [0], [0], [1], [0, 0, 1, 1], [], []>} : vector<8x63xf32>, vector<63x21xf32>, vector<8x21xf32> -> vector<8x21xf32>
      %c5_82 = arith.constant 5 : index
      %c0_83 = arith.constant 0 : index
      %c0_84 = arith.constant 0 : index
      %111 = vector.load %arg3[%c5_82, %c0_83, %c0_84] : memref<9x1x21xf32, #tpu.memory_space<vmem>>, vector<1x1x21xf32>
      %112 = vector.shape_cast %111 : vector<1x1x21xf32> to vector<1x21xf32>
      %113 = vector.broadcast %112 : vector<1x21xf32> to vector<8x21xf32>
      %114 = arith.addf %110, %113 : vector<8x21xf32>
      %c8 = arith.constant 8 : index
      %c0_85 = arith.constant 0 : index
      %c0_86 = arith.constant 0 : index
      %115 = vector.load %arg2[%c8, %c0_85, %c0_86] : memref<9x63x21xf32, #tpu.memory_space<vmem>>, vector<1x63x21xf32>
      %116 = vector.shape_cast %115 : vector<1x63x21xf32> to vector<63x21xf32>
      %cst_87 = arith.constant dense<0.000000e+00> : vector<8x21xf32>
      %117 = tpu.matmul %21, %116, %cst_87 {dimension_numbers = #tpu.dot_dimension_numbers<[1], [0], [0], [1], [0, 0, 1, 1], [], []>} : vector<8x63xf32>, vector<63x21xf32>, vector<8x21xf32> -> vector<8x21xf32>
      %c8_88 = arith.constant 8 : index
      %c0_89 = arith.constant 0 : index
      %c0_90 = arith.constant 0 : index
      %118 = vector.load %arg3[%c8_88, %c0_89, %c0_90] : memref<9x1x21xf32, #tpu.memory_space<vmem>>, vector<1x1x21xf32>
      %119 = vector.shape_cast %118 : vector<1x1x21xf32> to vector<1x21xf32>
      %120 = vector.broadcast %119 : vector<1x21xf32> to vector<8x21xf32>
      %121 = arith.addf %117, %120 : vector<8x21xf32>
      %cst_91 = arith.constant 0.218217894 : f32
      %122 = vector.broadcast %cst_91 : f32 to vector<8x21xf32>
      %123 = arith.mulf %107, %122 : vector<8x21xf32>
      %cst_92 = arith.constant dense<0.000000e+00> : vector<8x8xf32>
      %124 = tpu.matmul %123, %114, %cst_92 {dimension_numbers = #tpu.dot_dimension_numbers<[1], [1], [0], [0], [0, 0, 1, 0], [], []>} : vector<8x21xf32>, vector<8x21xf32>, vector<8x8xf32> -> vector<8x8xf32>
      %cst_93 = arith.constant dense<0xFF800000> : vector<8xf32>
      %125 = vector.multi_reduction <maximumf>, %124, %cst_93 [1] : vector<8x8xf32> to vector<8xf32>
      %126 = vector.shape_cast %125 : vector<8xf32> to vector<8x1xf32>
      %127 = vector.broadcast %126 : vector<8x1xf32> to vector<8x8xf32>
      %128 = arith.subf %124, %127 : vector<8x8xf32>
      %129 = math.exp %128 : vector<8x8xf32>
      %cst_94 = arith.constant dense<0.000000e+00> : vector<8xf32>
      %130 = vector.multi_reduction <add>, %129, %cst_94 [1] : vector<8x8xf32> to vector<8xf32>
      %131 = vector.shape_cast %130 : vector<8xf32> to vector<8x1xf32>
      %132 = tpu.reciprocal %131 {approx = true} : vector<8x1xf32> -> vector<8x1xf32>
      %133 = vector.broadcast %132 : vector<8x1xf32> to vector<8x8xf32>
      %134 = arith.mulf %129, %133 : vector<8x8xf32>
      %cst_95 = arith.constant dense<0.000000e+00> : vector<8x21xf32>
      %135 = tpu.matmul %134, %121, %cst_95 {dimension_numbers = #tpu.dot_dimension_numbers<[1], [0], [0], [1], [0, 0, 1, 1], [], []>} : vector<8x8xf32>, vector<8x21xf32>, vector<8x21xf32> -> vector<8x21xf32>
      %c2_96 = arith.constant 2 : index
      %c0_97 = arith.constant 0 : index
      %c0_98 = arith.constant 0 : index
      %136 = vector.load %arg4[%c2_96, %c0_97, %c0_98] : memref<3x21x63xf32, #tpu.memory_space<vmem>>, vector<1x21x63xf32>
      %137 = vector.shape_cast %136 : vector<1x21x63xf32> to vector<21x63xf32>
      %cst_99 = arith.constant dense<0.000000e+00> : vector<8x63xf32>
      %138 = tpu.matmul %135, %137, %cst_99 {dimension_numbers = #tpu.dot_dimension_numbers<[1], [0], [0], [1], [0, 0, 1, 1], [], []>} : vector<8x21xf32>, vector<21x63xf32>, vector<8x63xf32> -> vector<8x63xf32>
      %139 = arith.addf %100, %138 : vector<8x63xf32>
      %c0_100 = arith.constant 0 : index
      %c0_101 = arith.constant 0 : index
      %140 = vector.load %arg5[%c0_100, %c0_101] : memref<1x63xf32, #tpu.memory_space<vmem>>, vector<1x63xf32>
      %141 = vector.broadcast %140 : vector<1x63xf32> to vector<8x63xf32>
      %142 = arith.addf %139, %141 : vector<8x63xf32>
      %143 = arith.addf %21, %142 : vector<8x63xf32>
      %c0_102 = arith.constant 0 : index
      %c0_103 = arith.constant 0 : index
      %144 = vector.load %arg6[%c0_102, %c0_103] : memref<1x63xf32, #tpu.memory_space<vmem>>, vector<1x63xf32>
      %c0_104 = arith.constant 0 : index
      %c0_105 = arith.constant 0 : index
      %145 = vector.load %arg7[%c0_104, %c0_105] : memref<1x63xf32, #tpu.memory_space<vmem>>, vector<1x63xf32>
      %cst_106 = arith.constant dense<0.000000e+00> : vector<8xf32>
      %146 = vector.multi_reduction <add>, %143, %cst_106 [1] : vector<8x63xf32> to vector<8xf32>
      %147 = vector.shape_cast %146 : vector<8xf32> to vector<8x1xf32>
      %cst_107 = arith.constant 6.300000e+01 : f32
      %148 = vector.broadcast %cst_107 : f32 to vector<8x1xf32>
      %149 = arith.divf %147, %148 : vector<8x1xf32>
      %150 = arith.mulf %143, %143 : vector<8x63xf32>
      %cst_108 = arith.constant dense<0.000000e+00> : vector<8xf32>
      %151 = vector.multi_reduction <add>, %150, %cst_108 [1] : vector<8x63xf32> to vector<8xf32>
      %152 = vector.shape_cast %151 : vector<8xf32> to vector<8x1xf32>
      %cst_109 = arith.constant 6.300000e+01 : f32
      %153 = vector.broadcast %cst_109 : f32 to vector<8x1xf32>
      %154 = arith.divf %152, %153 : vector<8x1xf32>
      %155 = arith.mulf %149, %149 : vector<8x1xf32>
      %156 = arith.subf %154, %155 : vector<8x1xf32>
      %157 = vector.broadcast %149 : vector<8x1xf32> to vector<8x63xf32>
      %158 = arith.subf %143, %157 : vector<8x63xf32>
      %cst_110 = arith.constant 9.99999974E-6 : f32
      %159 = vector.broadcast %cst_110 : f32 to vector<8x1xf32>
      %160 = arith.addf %156, %159 : vector<8x1xf32>
      %161 = math.rsqrt %160 : vector<8x1xf32>
      %162 = vector.broadcast %161 : vector<8x1xf32> to vector<8x63xf32>
      %163 = arith.mulf %158, %162 : vector<8x63xf32>
      %164 = vector.broadcast %144 : vector<1x63xf32> to vector<8x63xf32>
      %165 = arith.mulf %163, %164 : vector<8x63xf32>
      %166 = vector.broadcast %145 : vector<1x63xf32> to vector<8x63xf32>
      %167 = arith.addf %165, %166 : vector<8x63xf32>
      %c0_111 = arith.constant 0 : index
      %c0_112 = arith.constant 0 : index
      %168 = vector.load %arg17[%c0_111, %c0_112] : memref<8x63xf32, #tpu.memory_space<vmem>>, vector<8x63xf32>
      tpu.vector_store %arg17[%c0_111, %c0_112], %167 {strides = array<i32>} : memref<8x63xf32, #tpu.memory_space<vmem>>, vector<8x63xf32>,
      %cst_113 = arith.constant 0.000000e+00 : f32
      %169 = vector.broadcast %cst_113 : f32 to vector<8x63xf32>
      %c0_114 = arith.constant 0 : index
      %c0_115 = arith.constant 0 : index
      %170 = vector.load %arg18[%c0_114, %c0_115] : memref<8x63xf32, #tpu.memory_space<vmem>>, vector<8x63xf32>
      tpu.vector_store %arg18[%c0_114, %c0_115], %169 {strides = array<i32>} : memref<8x63xf32, #tpu.memory_space<vmem>>, vector<8x63xf32>,
    } else {
    }
    %c0 = arith.constant 0 : index
    %c0_1 = arith.constant 0 : index
    %3 = vector.load %arg17[%c0, %c0_1] : memref<8x63xf32, #tpu.memory_space<vmem>>, vector<8x63xf32>
    %4 = arith.truncf %3 : vector<8x63xf32> to vector<8x63xbf16>
    %c0_2 = arith.constant 0 : index
    %c0_3 = arith.constant 0 : index
    %5 = vector.load %arg8[%c0_2, %c0_3] : memref<63x512xbf16, #tpu.memory_space<vmem>>, vector<63x512xbf16>
    %cst = arith.constant dense<0.000000e+00> : vector<8x512xf32>
    %6 = tpu.matmul %4, %5, %cst {dimension_numbers = #tpu.dot_dimension_numbers<[1], [0], [0], [1], [0, 0, 1, 1], [], []>} : vector<8x63xbf16>, vector<63x512xbf16>, vector<8x512xf32> -> vector<8x512xf32>
    %c0_4 = arith.constant 0 : index
    %c0_5 = arith.constant 0 : index
    %7 = vector.load %arg9[%c0_4, %c0_5] : memref<1x512xf32, #tpu.memory_space<vmem>>, vector<1x512xf32>
    %8 = vector.broadcast %7 : vector<1x512xf32> to vector<8x512xf32>
    %9 = arith.addf %6, %8 : vector<8x512xf32>
    %cst_6 = arith.constant 0.000000e+00 : f32
    %10 = vector.broadcast %cst_6 : f32 to vector<8x512xf32>
    %11 = arith.maximumf %9, %10 : vector<8x512xf32>
    %c0_7 = arith.constant 0 : index
    %c0_8 = arith.constant 0 : index
    %12 = vector.load %arg18[%c0_7, %c0_8] : memref<8x63xf32, #tpu.memory_space<vmem>>, vector<8x63xf32>
    %13 = arith.truncf %11 : vector<8x512xf32> to vector<8x512xbf16>
    %c0_9 = arith.constant 0 : index
    %c0_10 = arith.constant 0 : index
    %14 = vector.load %arg10[%c0_9, %c0_10] : memref<512x63xbf16, #tpu.memory_space<vmem>>, vector<512x63xbf16>
    %cst_11 = arith.constant dense<0.000000e+00> : vector<8x63xf32>
    %15 = tpu.matmul %13, %14, %cst_11 {dimension_numbers = #tpu.dot_dimension_numbers<[1], [0], [0], [1], [0, 0, 1, 1], [], []>} : vector<8x512xbf16>, vector<512x63xbf16>, vector<8x63xf32> -> vector<8x63xf32>
    %16 = arith.addf %12, %15 : vector<8x63xf32>
    %c0_12 = arith.constant 0 : index
    %c0_13 = arith.constant 0 : index
    %17 = vector.load %arg18[%c0_12, %c0_13] : memref<8x63xf32, #tpu.memory_space<vmem>>, vector<8x63xf32>
    tpu.vector_store %arg18[%c0_12, %c0_13], %16 {strides = array<i32>} : memref<8x63xf32, #tpu.memory_space<vmem>>, vector<8x63xf32>,
    %c3_i32 = arith.constant 3 : i32
    %18 = arith.cmpi eq, %arg0, %c3_i32 : i32
    %19 = arith.extui %18 : i1 to i32
    %c0_i32_14 = arith.constant 0 : i32
    %20 = arith.cmpi ne, %19, %c0_i32_14 : i32
    scf.if %20 {
      %c0_15 = arith.constant 0 : index
      %c0_16 = arith.constant 0 : index
      %21 = vector.load %arg18[%c0_15, %c0_16] : memref<8x63xf32, #tpu.memory_space<vmem>>, vector<8x63xf32>
      %22 = arith.addf %3, %21 : vector<8x63xf32>
      %c0_17 = arith.constant 0 : index
      %c0_18 = arith.constant 0 : index
      %23 = vector.load %arg11[%c0_17, %c0_18] : memref<1x63xf32, #tpu.memory_space<vmem>>, vector<1x63xf32>
      %24 = vector.broadcast %23 : vector<1x63xf32> to vector<8x63xf32>
      %25 = arith.addf %22, %24 : vector<8x63xf32>
      %c0_19 = arith.constant 0 : index
      %c0_20 = arith.constant 0 : index
      %26 = vector.load %arg12[%c0_19, %c0_20] : memref<1x63xf32, #tpu.memory_space<vmem>>, vector<1x63xf32>
      %c0_21 = arith.constant 0 : index
      %c0_22 = arith.constant 0 : index
      %27 = vector.load %arg13[%c0_21, %c0_22] : memref<1x63xf32, #tpu.memory_space<vmem>>, vector<1x63xf32>
      %cst_23 = arith.constant dense<0.000000e+00> : vector<8xf32>
      %28 = vector.multi_reduction <add>, %25, %cst_23 [1] : vector<8x63xf32> to vector<8xf32>
      %29 = vector.shape_cast %28 : vector<8xf32> to vector<8x1xf32>
      %cst_24 = arith.constant 6.300000e+01 : f32
      %30 = vector.broadcast %cst_24 : f32 to vector<8x1xf32>
      %31 = arith.divf %29, %30 : vector<8x1xf32>
      %32 = arith.mulf %25, %25 : vector<8x63xf32>
      %cst_25 = arith.constant dense<0.000000e+00> : vector<8xf32>
      %33 = vector.multi_reduction <add>, %32, %cst_25 [1] : vector<8x63xf32> to vector<8xf32>
      %34 = vector.shape_cast %33 : vector<8xf32> to vector<8x1xf32>
      %cst_26 = arith.constant 6.300000e+01 : f32
      %35 = vector.broadcast %cst_26 : f32 to vector<8x1xf32>
      %36 = arith.divf %34, %35 : vector<8x1xf32>
      %37 = arith.mulf %31, %31 : vector<8x1xf32>
      %38 = arith.subf %36, %37 : vector<8x1xf32>
      %39 = vector.broadcast %31 : vector<8x1xf32> to vector<8x63xf32>
      %40 = arith.subf %25, %39 : vector<8x63xf32>
      %cst_27 = arith.constant 9.99999974E-6 : f32
      %41 = vector.broadcast %cst_27 : f32 to vector<8x1xf32>
      %42 = arith.addf %38, %41 : vector<8x1xf32>
      %43 = math.rsqrt %42 : vector<8x1xf32>
      %44 = vector.broadcast %43 : vector<8x1xf32> to vector<8x63xf32>
      %45 = arith.mulf %40, %44 : vector<8x63xf32>
      %46 = vector.broadcast %26 : vector<1x63xf32> to vector<8x63xf32>
      %47 = arith.mulf %45, %46 : vector<8x63xf32>
      %48 = vector.broadcast %27 : vector<1x63xf32> to vector<8x63xf32>
      %49 = arith.addf %47, %48 : vector<8x63xf32>
      %c0_28 = arith.constant 0 : index
      %c0_29 = arith.constant 0 : index
      %50 = vector.load %arg14[%c0_28, %c0_29] : memref<63x128xf32, #tpu.memory_space<vmem>>, vector<63x128xf32>
      %cst_30 = arith.constant dense<0.000000e+00> : vector<8x128xf32>
      %51 = tpu.matmul %49, %50, %cst_30 {dimension_numbers = #tpu.dot_dimension_numbers<[1], [0], [0], [1], [0, 0, 1, 1], [], []>} : vector<8x63xf32>, vector<63x128xf32>, vector<8x128xf32> -> vector<8x128xf32>
      %c0_31 = arith.constant 0 : index
      %c0_32 = arith.constant 0 : index
      %52 = vector.load %arg15[%c0_31, %c0_32] : memref<1x128xf32, #tpu.memory_space<vmem>>, vector<1x128xf32>
      %53 = vector.broadcast %52 : vector<1x128xf32> to vector<8x128xf32>
      %54 = arith.addf %51, %53 : vector<8x128xf32>
      %c0_33 = arith.constant 0 : index
      %c0_34 = arith.constant 0 : index
      %55 = vector.load %arg16[%c0_33, %c0_34] : memref<8x128xf32, #tpu.memory_space<vmem>>, vector<8x128xf32>
      tpu.vector_store %arg16[%c0_33, %c0_34], %54 {strides = array<i32>} : memref<8x128xf32, #tpu.memory_space<vmem>>, vector<8x128xf32>,
    } else {
    }
    return
  }
  func.func @transform_0(%arg0: i32) -> (i32, i32) {
    %c0_i32 = arith.constant 0 : i32
    %c0_i32_0 = arith.constant 0 : i32
    %c0_i32_1 = arith.constant 0 : i32
    return %c0_i32, %c0_i32_0 : i32, i32
  }
  func.func @transform_1(%arg0: i32) -> (i32, i32, i32) {
    %c0_i32 = arith.constant 0 : i32
    %c0_i32_0 = arith.constant 0 : i32
    %c0_i32_1 = arith.constant 0 : i32
    %c0_i32_2 = arith.constant 0 : i32
    return %c0_i32, %c0_i32_0, %c0_i32_1 : i32, i32, i32
  }
  func.func @transform_2(%arg0: i32) -> (i32, i32, i32) {
    %c0_i32 = arith.constant 0 : i32
    %c0_i32_0 = arith.constant 0 : i32
    %c0_i32_1 = arith.constant 0 : i32
    %c0_i32_2 = arith.constant 0 : i32
    return %c0_i32, %c0_i32_0, %c0_i32_1 : i32, i32, i32
  }
  func.func @transform_3(%arg0: i32) -> (i32, i32, i32) {
    %c0_i32 = arith.constant 0 : i32
    %c0_i32_0 = arith.constant 0 : i32
    %c0_i32_1 = arith.constant 0 : i32
    %c0_i32_2 = arith.constant 0 : i32
    return %c0_i32, %c0_i32_0, %c0_i32_1 : i32, i32, i32
  }
  func.func @transform_4(%arg0: i32) -> (i32, i32) {
    %c0_i32 = arith.constant 0 : i32
    %c0_i32_0 = arith.constant 0 : i32
    %c0_i32_1 = arith.constant 0 : i32
    return %c0_i32, %c0_i32_0 : i32, i32
  }
  func.func @transform_5(%arg0: i32) -> (i32, i32) {
    %c0_i32 = arith.constant 0 : i32
    %c0_i32_0 = arith.constant 0 : i32
    %c0_i32_1 = arith.constant 0 : i32
    return %c0_i32, %c0_i32_0 : i32, i32
  }
  func.func @transform_6(%arg0: i32) -> (i32, i32) {
    %c0_i32 = arith.constant 0 : i32
    %c0_i32_0 = arith.constant 0 : i32
    %c0_i32_1 = arith.constant 0 : i32
    return %c0_i32, %c0_i32_0 : i32, i32
  }
  func.func @transform_7(%arg0: i32) -> (i32, i32) {
    %c0_i32 = arith.constant 0 : i32
    %c0_i32_0 = arith.constant 0 : i32
    return %c0_i32, %arg0 : i32, i32
  }
  func.func @transform_8(%arg0: i32) -> (i32, i32) {
    %c0_i32 = arith.constant 0 : i32
    %c0_i32_0 = arith.constant 0 : i32
    return %c0_i32, %arg0 : i32, i32
  }
  func.func @transform_9(%arg0: i32) -> (i32, i32) {
    %c0_i32 = arith.constant 0 : i32
    %c0_i32_0 = arith.constant 0 : i32
    return %arg0, %c0_i32 : i32, i32
  }
  func.func @transform_10(%arg0: i32) -> (i32, i32) {
    %c0_i32 = arith.constant 0 : i32
    %c0_i32_0 = arith.constant 0 : i32
    %c0_i32_1 = arith.constant 0 : i32
    return %c0_i32, %c0_i32_0 : i32, i32
  }
  func.func @transform_11(%arg0: i32) -> (i32, i32) {
    %c0_i32 = arith.constant 0 : i32
    %c0_i32_0 = arith.constant 0 : i32
    %c0_i32_1 = arith.constant 0 : i32
    return %c0_i32, %c0_i32_0 : i32, i32
  }
  func.func @transform_12(%arg0: i32) -> (i32, i32) {
    %c0_i32 = arith.constant 0 : i32
    %c0_i32_0 = arith.constant 0 : i32
    %c0_i32_1 = arith.constant 0 : i32
    return %c0_i32, %c0_i32_0 : i32, i32
  }
  func.func @transform_13(%arg0: i32) -> (i32, i32) {
    %c0_i32 = arith.constant 0 : i32
    %c0_i32_0 = arith.constant 0 : i32
    %c0_i32_1 = arith.constant 0 : i32
    return %c0_i32, %c0_i32_0 : i32, i32
  }
  func.func @transform_14(%arg0: i32) -> (i32, i32) {
    %c0_i32 = arith.constant 0 : i32
    %c0_i32_0 = arith.constant 0 : i32
    %c0_i32_1 = arith.constant 0 : i32
    return %c0_i32, %c0_i32_0 : i32, i32
  }
  func.func @transform_15(%arg0: i32) -> (i32, i32) {
    %c0_i32 = arith.constant 0 : i32
    %c0_i32_0 = arith.constant 0 : i32
    %c0_i32_1 = arith.constant 0 : i32
    return %c0_i32, %c0_i32_0 : i32, i32
  }
}

</mosaic_0001>

<bundles_post_ra>
// kernel: tpu_custom_call.1
= control target key start
LH: loop header
LB: loop body
LE: loop exit
PB: predicated region body
PF: predicated region fallthrough
CT: control target
= control target key end

     0   :  { %s4586_s0 = inlined_call_operand.vmem [shape: f32[8,63], index: 0, kind: input, shape index: {}]   ;;  %s4587_s1 = inlined_call_operand.vmem [shape: f32[9,63,21], index: 1, kind: input, shape index: {}]   ;;  %s4588_s2 = inlined_call_operand.vmem [shape: f32[9,1,21], index: 2, kind: input, shape index: {}]   ;;  %s4589_s3 = inlined_call_operand.vmem [shape: f32[3,21,63], index: 3, kind: input, shape index: {}]   ;;  %s4590_s4 = inlined_call_operand.vmem [shape: f32[1,63], index: 4, kind: input, shape index: {}]   ;;  %s4591_s5 = inlined_call_operand.vmem [shape: f32[1,63], index: 5, kind: input, shape index: {}]   ;;  %s4592_s6 = inlined_call_operand.vmem [shape: f32[1,63], index: 6, kind: input, shape index: {}]   ;;  %s4593_s7 = inlined_call_operand.vmem [shape: bf16[63,2048], index: 7, kind: input, shape index: {}]   ;;  %s4594_s8 = inlined_call_operand.vmem [shape: f32[1,2048], index: 8, kind: input, shape index: {}]   ;;  %s4595_s9 = inlined_call_operand.vmem [shape: bf16[2048,63], index: 9, kind: input, shape index: {}]   ;;  %s4596_s10 = inlined_call_operand.vmem [shape: f32[1,63], index: 10, kind: input, shape index: {}]   ;;  %s4597_s11 = inlined_call_operand.vmem [shape: f32[1,63], index: 11, kind: input, shape index: {}]   ;;  %s4598_s12 = inlined_call_operand.vmem [shape: f32[1,63], index: 12, kind: input, shape index: {}]   ;;  %s4599_s13 = inlined_call_operand.vmem [shape: f32[63,128], index: 13, kind: input, shape index: {}]   ;;  %s4600_s14 = inlined_call_operand.vmem [shape: f32[1,128], index: 14, kind: input, shape index: {}]   ;;  %s4601_s15 = inlined_call_operand.hbm [shape: f32[8,128], index: 15, kind: output, shape index: {}]  }
   0x1   :  { %4605 = sst [smem:[#allocation11_spill]] %s4593_s7 }
   0x2   :  { %20 = vsyncpa [#allocation6], 0  ;;  %s3936_s18 = smov 0   ;;  %s3938_s19 = smov 0  }
   0x3   :  { %s3940_s20 = smov 0  }
   0x4 LB: > { %4606 = sst [smem:[#allocation8_spill]] %s3839_s19  ;;  %s3952_s21 = sadd.s32 4294967295, %s3843_s20   ;;  %s3843_s20 = sphi %s3940_s20, %s4612_s20   ;;  %s3839_s19 = sphi %s3938_s19, %s4614_s19   ;;  %s3835_s18 = sphi %s3936_s18, %s4613_s18  }
   0x5   : > { %s3955_s22 = sadd.s32 1, %s3843_s20   ;;  %s180_s24 = sadd.s32 1, %s3839_s19 }
   0x6   : > { %4607 = sst [smem:[#allocation9_spill]] %s3955_s22  ;;  %s177_s23 = ssub.s32 %s3843_s20, %s3955_s22 }
   0x7   : > { %p178_p0 = scmp.eq.s32.totalorder %s177_s23, 0  ;;  %p187_p1 = scmp.ne.s32.totalorder %s3839_s19, %s3835_s18 }
   0x8   : > { %p188_p2 = scmp.eq.s32.totalorder %s3843_s20, 0  ;;  %p2939_p4 = scmp.ge.s32.totalorder %s3843_s20, 4 }
   0x9   : > { %s3964_s25 = scalar_select %p178_p0, %s3839_s19, %s180_s24  }
   0xa   : > { %p189_p3 = por %p188_p2, %p187_p1  ;;  %427 = sbr.rel (%p2939_p4) target bundleno = 35 (0x23), region = 64 }
   0xb   : > { %4608 = sst [smem:[#allocation10_spill]] %s3964_s25 }
  0x11   : > { %430 = sbr.rel (!%p189_p3) target bundleno = 35 (0x23), region = 68  ;;  %s432_s26 = sand.u32 (%p189_p3), 1, %s3839_s19  }
  0x12   : > { %s3133_s27 = sshll.u32 (%p189_p3), %s3843_s20, 4  ;;  %s2940_s28 = sshll.u32 (%p189_p3), %s432_s26, 7 }
  0x13   : > { %s4609_s7 = sld [smem:[#allocation11_spill]] (%p189_p3)  ;;  %s434_s17 = scalar_lea.vmem (%p189_p3), [#allocation4], %s2940_s28 }
  0x19   : > { %s3972_s16 = scalar_lea.vmem %s4609_s7, %s3133_s27 }
  0x1a   : > { %v450_v0 = vld [vmem:[%s3972_s16] sm:$0xff]  ;;  %v452_v1 = vld [vmem:[%s3972_s16 + $0x8] sm:$0xff] }
  0x1b   : > { %v454_v2 = vld [vmem:[%s3972_s16 + $0x40] sm:$0xff]  ;;  %451 = vst [vmem:[%s434_s17] sm:$0xff] %v450_v0  ;;  %453 = vst [vmem:[%s434_s17 + $0x8] sm:$0xff] %v452_v1  ;;  %v456_v3 = vld [vmem:[%s3972_s16 + $0x48] sm:$0xff] }
  0x1c   : > { %455 = vst [vmem:[%s434_s17 + $0x10] sm:$0xff] %v454_v2  ;;  %v458_v4 = vld [vmem:[%s3972_s16 + $0x80] sm:$0xff]  ;;  %v460_v5 = vld [vmem:[%s3972_s16 + $0x88] sm:$0xff]  ;;  %457 = vst [vmem:[%s434_s17 + $0x18] sm:$0xff] %v456_v3 }
  0x1d   : > { %459 = vst [vmem:[%s434_s17 + $0x20] sm:$0xff] %v458_v4  ;;  %461 = vst [vmem:[%s434_s17 + $0x28] sm:$0xff] %v460_v5  ;;  %v462_v6 = vld [vmem:[%s3972_s16 + $0xc0] sm:$0xff]  ;;  %v464_v7 = vld [vmem:[%s3972_s16 + $0xc8] sm:$0xff] }
  0x1e   : > { %v466_v8 = vld [vmem:[%s3972_s16 + $0x100] sm:$0xff]  ;;  %463 = vst [vmem:[%s434_s17 + $0x30] sm:$0xff] %v462_v6  ;;  %465 = vst [vmem:[%s434_s17 + $0x38] sm:$0xff] %v464_v7  ;;  %v468_v9 = vld [vmem:[%s3972_s16 + $0x108] sm:$0xff] }
  0x1f   : > { %467 = vst [vmem:[%s434_s17 + $0x40] sm:$0xff] %v466_v8  ;;  %v470_v10 = vld [vmem:[%s3972_s16 + $0x140] sm:$0xff]  ;;  %v472_v11 = vld [vmem:[%s3972_s16 + $0x148] sm:$0xff]  ;;  %469 = vst [vmem:[%s434_s17 + $0x48] sm:$0xff] %v468_v9 }
  0x20   : > { %471 = vst [vmem:[%s434_s17 + $0x50] sm:$0xff] %v470_v10  ;;  %473 = vst [vmem:[%s434_s17 + $0x58] sm:$0xff] %v472_v11  ;;  %v474_v12 = vld [vmem:[%s3972_s16 + $0x180] sm:$0xff]  ;;  %v476_v13 = vld [vmem:[%s3972_s16 + $0x188] sm:$0xff] }
  0x21   : > { %v478_v14 = vld [vmem:[%s3972_s16 + $0x1c0] sm:$0xff]  ;;  %475 = vst [vmem:[%s434_s17 + $0x60] sm:$0xff] %v474_v12  ;;  %477 = vst [vmem:[%s434_s17 + $0x68] sm:$0xff] %v476_v13  ;;  %v480_v15 = vld [vmem:[%s3972_s16 + $0x1c8] sm:$0xff] }
  0x22   : > { %479 = vst [vmem:[%s434_s17 + $0x70] sm:$0xff] %v478_v14  ;;  %481 = vst [vmem:[%s434_s17 + $0x78] sm:$0xff] %v480_v15 }
  0x23 PF: > { %p2943_p5 = scmp.ge.s32.totalorder %s3843_s20, 1  ;;  %p503_p6 = scmp.lt.s32.totalorder %s3843_s20, 5 }
  0x25   : > { %p504_p7 = pnand %p2943_p5, %p503_p6 }
  0x26   : > { %s510_s23 = sand.u32 (!%p504_p7), 1, %s3835_s18   ;;  %s2945_s24 = sshll.u32 (!%p504_p7), %s3952_s21, 2 }
  0x27   : > { %507 = sbr.rel (%p504_p7) target bundleno = 4014 (0xfae), region = 99  ;;  %s2944_s26 = sshll.u32 (!%p504_p7), %s510_s23, 7 }
  0x28   : > { %p563_p8 = scmp.lt.s32.totalorder (!%p504_p7), %s2945_s24, 15  ;;  %s2946_s27 = sshll.u32 (!%p504_p7), %s3952_s21, 6 }
  0x29   : > { %p568_p9 = scmp.lt.s32.totalorder (!%p504_p7), %s2946_s27, 255  ;;  %s4006_s18 = scalar_lea.vmem (!%p504_p7), [#allocation4], %s2944_s26 }
  0x2a   : > { %p2948_p10 = scmp.ne.s32.totalorder (!%p504_p7), %s3952_s21, 0 }
  0x2e   : > { %s4616_s24 = smov (!%p563_p8, %s2945_s24), 15  ;;  %s4618_s27 = smov (!%p568_p9, %s2946_s27), 255 }
  0x2f   : > { %s565_s30 = scalar_lea.vmem %s4594_s8, %s4616_s24  ;;  %s2947_s20 = sshll.u32 %s4618_s27, 2  ;;  %v2952_v16 = vld [vmem:[%s4587_s1 + $0xc0] sm:$0xff] (!%p2948_p10)  ;;  %v2953_v17 = vld [vmem:[%s4587_s1 + $0xc8] sm:$0xff] (!%p2948_p10)  ;;  %v3845_v19 = vmov (!%p2948_p10), 0.0|0.0   ;;  %v2954_v22 = vld [vmem:[%s4587_s1 + $0xd0] sm:$0xff] (!%p2948_p10)  ;;  %vm594_vm0 = vcmask (!%p2948_p10), 515072  }
  0x30   : > { %s4004_s7 = scalar_lea.vmem %s4595_s9, %s2947_s20  ;;  %577 = sbr.rel (%p2948_p10) target bundleno = 3135 (0xc3f), region = 107  ;;  %v579_v18 = vld [vmem:[%s4587_s1] sm:$0xff] (!%p2948_p10)  ;;  %3552 = vmatprep.subr.bf16.mxu1 (!%p2948_p10), %v3845_v19  ;;  %3539 = vmatprep.subr.bf16.mxu0 (!%p2948_p10), %v3845_v19  ;;  %v3553_v20 = vpack.c.bf16 (!%p2948_p10), %v2953_v17, %v2952_v16  ;;  %v580_v21 = vld [vmem:[%s4587_s1 + $0x8] sm:$0xff] (!%p2948_p10)  ;;  %v2955_v23 = vld [vmem:[%s4587_s1 + $0xd8] sm:$0xff] (!%p2948_p10)  ;;  %vm3846_vm1 = vmmov (!%p2948_p10), 0   ;;  %v3847_v27 = vmov (!%p2948_p10), 0.0  }
  0x31   : > { %v3540_v24 = vpack.c.bf16 (!%p2948_p10), %v580_v21, %v579_v18  ;;  %v581_v25 = vld [vmem:[%s4587_s1 + $0x10] sm:$0xff] (!%p2948_p10)  ;;  %v582_v26 = vld [vmem:[%s4587_s1 + $0x18] sm:$0xff] (!%p2948_p10)  ;;  %3327 = vmatprep.mubr.msk.f32.mxu1 (!%p2948_p10), %vm3846_vm1, %v3847_v27  ;;  %3308 = vmatprep.mubr.msk.f32.mxu0 (!%p2948_p10), %vm3846_vm1, %v3847_v27  ;;  %2160 = vst.msk [vmem:[#allocation3] sm:$0xff] (!%p2948_p10), %vm594_vm0, %v3847_v27  ;;  %v3556_v28 = vpack.c.bf16 (!%p2948_p10), %v2955_v23, %v2954_v22  ;;  %v2956_v30 = vld [vmem:[%s4587_s1 + $0xe0] sm:$0xff] (!%p2948_p10)  ;;  %vm598_vm2 = vcmask (!%p2948_p10), 1046528   ;;  %vm3848_vm3 = vmmov (!%p2948_p10), 1  }
  0x32   : > { %3554 = vmatpush3.bf16.msra.mxu1 (!%p2948_p10), %v3553_v20  ;;  %v3543_v29 = vpack.c.bf16 (!%p2948_p10), %v582_v26, %v581_v25  ;;  %v2957_v31 = vld [vmem:[%s4587_s1 + $0xe8] sm:$0xff] (!%p2948_p10)  ;;  %v583_v32 = vld [vmem:[%s4587_s1 + $0x20] sm:$0xff] (!%p2948_p10)  ;;  %v2958_v36 = vld [vmem:[%s4587_s1 + $0xf0] sm:$0xff] (!%p2948_p10)  ;;  %vm853_vm5 = vcmask (!%p2948_p10), 171008   ;;  %vm930_vm6 = vcmask (!%p2948_p10), 64512   ;;  %vm1456_vm7 = vcmask (!%p2948_p10), 1044480  }
  0x33   : > { %3541 = vmatpush3.bf16.msra.mxu0 (!%p2948_p10), %v3540_v24  ;;  %3555 = vmatprep.subr.bf16.mxu1 (!%p2948_p10), %v3845_v19  ;;  %v584_v33 = vld [vmem:[%s4587_s1 + $0x28] sm:$0xff] (!%p2948_p10)  ;;  %v3559_v34 = vpack.c.bf16 (!%p2948_p10), %v2957_v31, %v2956_v30  ;;  %v2959_v37 = vld [vmem:[%s4587_s1 + $0xf8] sm:$0x7f] (!%p2948_p10)  ;;  %v585_v38 = vld [vmem:[%s4587_s1 + $0x30] sm:$0xff] (!%p2948_p10) }
  0x34   : > { %3542 = vmatprep.subr.bf16.mxu0 (!%p2948_p10), %v3845_v19  ;;  %v3546_v35 = vpack.c.bf16 (!%p2948_p10), %v584_v33, %v583_v32  ;;  %v586_v39 = vld [vmem:[%s4587_s1 + $0x38] sm:$0x7f] (!%p2948_p10)  ;;  %v3562_v40 = vpack.c.bf16 (!%p2948_p10), %v2959_v37, %v2958_v36  ;;  %vm4070_vm4 = vmpackc.low (!%p2948_p10), %vm598_vm2, %vm3848_vm3  ;;  %v4080_v43 = vld [vmem:[%s4586_s0] sm:$0xff] (!%p2948_p10) }
  0x35   : > { %v3549_v42 = vpack.c.bf16 (!%p2948_p10), %v586_v39, %v585_v38  ;;  %v2961_v44 = vld [vmem:[%s4588_s2 + $0x3] ss:$0 sm:$0xff] (!%p2948_p10)  ;;  %v2949_v45 = vld [vmem:[%s4588_s2] ss:$0 sm:$0xff] (!%p2948_p10)  ;;  %v2965_v54 = vld [vmem:[%s4587_s1 + $0x188] sm:$0xff] (!%p2948_p10) }
  0x36   : > { %3557 = vmatpush3.bf16.msra.mxu1 (!%p2948_p10), %v3556_v28  ;;  %v2964_v53 = vld [vmem:[%s4587_s1 + $0x180] sm:$0xff] (!%p2948_p10)  ;;  %v2966_v55 = vld [vmem:[%s4587_s1 + $0x190] sm:$0xff] (!%p2948_p10)  ;;  %v2967_v57 = vld [vmem:[%s4587_s1 + $0x198] sm:$0xff] (!%p2948_p10) }
  0x37   : > { %3544 = vmatpush3.bf16.msra.mxu0 %v3543_v29  ;;  %3558 = vmatprep.subr.bf16.mxu1 %v3845_v19  ;;  %v3566_v56 = vpack.c.bf16 %v2965_v54, %v2964_v53  ;;  %v3569_v58 = vpack.c.bf16 %v2967_v57, %v2966_v55  ;;  %v2968_v59 = vld [vmem:[%s4587_s1 + $0x1a0] sm:$0xff]  ;;  %v2969_v60 = vld [vmem:[%s4587_s1 + $0x1a8] sm:$0xff]  ;;  %v2970_v62 = vld [vmem:[%s4587_s1 + $0x1b0] sm:$0xff] }
  0x38   : > { %3545 = vmatprep.subr.bf16.mxu0 %v3845_v19  ;;  %v3572_v61 = vpack.c.bf16 %v2969_v60, %v2968_v59  ;;  %v2971_v63 = vld [vmem:[%s4587_s1 + $0x1b8] sm:$0x7f]  ;;  %v2973_v10 = vld [vmem:[%s4588_s2 + $0x6] ss:$0 sm:$0xff]  ;;  %v2992_v13 = vld [vmem:[%s4587_s1 + $0x108] sm:$0xff] }
  0x39   : > { %v3575_v0 = vpack.c.bf16 %v2971_v63, %v2970_v62  ;;  %v2991_v12 = vld [vmem:[%s4587_s1 + $0x100] sm:$0xff]  ;;  %v2993_v16 = vld [vmem:[%s4587_s1 + $0x110] sm:$0xff]  ;;  %v2994_v17 = vld [vmem:[%s4587_s1 + $0x118] sm:$0xff] }
  0x3a   : > { %3560 = vmatpush3.bf16.msra.mxu1 %v3559_v34  ;;  %v3592_v15 = vpack.c.bf16 %v2992_v13, %v2991_v12  ;;  %v3595_v18 = vpack.c.bf16 %v2994_v17, %v2993_v16  ;;  %v2995_v20 = vld [vmem:[%s4587_s1 + $0x120] sm:$0xff]  ;;  %v2996_v21 = vld [vmem:[%s4587_s1 + $0x128] sm:$0xff]  ;;  %v2997_v23 = vld [vmem:[%s4587_s1 + $0x130] sm:$0xff] }
  0x3b   : > { %3547 = vmatpush3.bf16.msra.mxu0 %v3546_v35  ;;  %3561 = vmatprep.subr.bf16.mxu1 %v3845_v19  ;;  %v3598_v22 = vpack.c.bf16 %v2996_v21, %v2995_v20  ;;  %v2998_v24 = vld [vmem:[%s4587_s1 + $0x138] sm:$0x7f]  ;;  %v2979_v28 = vld [vmem:[%s4587_s1 + $0x40] sm:$0xff]  ;;  %v2980_v29 = vld [vmem:[%s4587_s1 + $0x48] sm:$0xff] }
  0x3c   : > { %3548 = vmatprep.subr.bf16.mxu0 %v3845_v19  ;;  %v3601_v25 = vpack.c.bf16 %v2998_v24, %v2997_v23  ;;  %v3579_v31 = vpack.c.bf16 %v2980_v29, %v2979_v28  ;;  %v2981_v33 = vld [vmem:[%s4587_s1 + $0x50] sm:$0xff]  ;;  %v2982_v34 = vld [vmem:[%s4587_s1 + $0x58] sm:$0xff]  ;;  %v2983_v36 = vld [vmem:[%s4587_s1 + $0x60] sm:$0xff] }
  0x3d   : > { %v3582_v35 = vpack.c.bf16 %v2982_v34, %v2981_v33  ;;  %v2984_v37 = vld [vmem:[%s4587_s1 + $0x68] sm:$0xff]  ;;  %v2985_v39 = vld [vmem:[%s4587_s1 + $0x70] sm:$0xff]  ;;  %v3010_v54 = vld [vmem:[%s4587_s1 + $0x1f8] sm:$0x7f] }
  0x3e   : > { %3564 = vmatpush3.bf16.msk.msra.mxu1 %vm4070_vm4, %v3562_v40  ;;  %v3585_v38 = vpack.c.bf16 %v2984_v37, %v2983_v36  ;;  %v2986_v40 = vld [vmem:[%s4587_s1 + $0x78] sm:$0x7f]  ;;  %v3009_v53 = vld [vmem:[%s4587_s1 + $0x1f0] sm:$0xff]  ;;  %v1016_v57 = vld [vmem:[%s4589_s3 + $0x8] sm:$0xff] }
  0x3f   : > { %3551 = vmatpush3.bf16.msk.msra.mxu0 %vm4070_vm4, %v3549_v42  ;;  %3349 = vmatprep.subr.mxu1 %v3847_v27  ;;  %v3588_v42 = vpack.c.bf16 %v2986_v40, %v2985_v39  ;;  %v3614_v55 = vpack.c.bf16 %v3010_v54, %v3009_v53  ;;  %v1017_v59 = vld [vmem:[%s4589_s3 + $0x10] sm:$0x1f]  ;;  %v3000_v60 = vld [vmem:[%s4588_s2 + $0x4] ss:$0 sm:$0xff]  ;;  %v3038_v23 = vld [vmem:[%s4587_s1 + $0x148] sm:$0xff] }
  0x40   : > { %3565 = vmatprep.subr.bf16.mxu0 %v3845_v19  ;;  %v3019_v28 = vld [vmem:[%s4589_s3 + $0x20] sm:$0xff]  ;;  %v3039_v33 = vld [vmem:[%s4587_s1 + $0x150] sm:$0xff]  ;;  %v3040_v34 = vld [vmem:[%s4587_s1 + $0x158] sm:$0xff] }
  0x41   : > { %3328 = vmatmul.mubr.msk.f32.vlgmr.msra.gmra.mrb[0].mxu1 %vm594_vm0, %v4080_v43  ;;  %v3041_v36 = vld [vmem:[%s4587_s1 + $0x160] sm:$0xff]  ;;  %v3042_v37 = vld [vmem:[%s4587_s1 + $0x168] sm:$0xff]  ;;  %v3043_v39 = vld [vmem:[%s4587_s1 + $0x170] sm:$0xff] }
  0x42   : > { %3309 = vmatmul.mubr.msk.f32.vlgmr.msra.gmra.mrb[0].mxu0 %vm594_vm0, %v4080_v43  ;;  %3351 = vmatprep.mubr.msk.f32.mxu1 %vm3846_vm1, %v3847_v27  ;;  %v3044_v40 = vld [vmem:[%s4587_s1 + $0x178] sm:$0x7f]  ;;  %v3030_v53 = vld [vmem:[%s4587_s1 + $0xa8] sm:$0xff] }
  0x43   : > { %3346 = vmatprep.mubr.msk.f32.mxu0 %vm3846_vm1, %v3847_v27  ;;  %3567 = vmatpush3.bf16.msra.mxu0 %v3566_v56  ;;  %v1015_v56 = vld [vmem:[%s4589_s3] sm:$0xff]  ;;  %v3058_v41 = vld [vmem:[%s4588_s2 + $0x8] ss:$0 sm:$0xff] }
  0x44   : > { %3568 = vmatprep.subr.bf16.mxu0 %v3845_v19 }
  0x47   : > { %3570 = vmatpush3.bf16.msra.mxu0 %v3569_v58  ;;  %v3621_v58 = vpack.c.bf16 %v1016_v57, %v1015_v56  ;;  %v3032_v56 = vld [vmem:[%s4587_s1 + $0xb8] sm:$0x7f] }
  0x48   : > { %3571 = vmatprep.subr.bf16.mxu0 %v3845_v19 }
  0x4b   : > { %3573 = vmatpush3.bf16.msra.mxu0 %v3572_v61 }
  0x4c   : > { %3574 = vmatprep.subr.bf16.mxu0 %v3845_v19 }
  0x4f   : > { %3577 = vmatpush3.bf16.msk.msra.mxu0 %vm4070_vm4, %v3575_v0 }
  0x50   : > { %3591 = vmatprep.subr.bf16.mxu0 %v3845_v19 }
  0x52   : > { %3347 = vmatmul.mubr.msk.f32.vlgmr.msra.gmra.mrb[2].mxu0 %vm594_vm0, %v4080_v43 }
  0x53   : > { %3394 = vmatprep.mubr.msk.f32.mxu0 %vm3846_vm1, %v3847_v27  ;;  %3593 = vmatpush3.bf16.msra.mxu0 %v3592_v15 }
  0x54   : > { %3594 = vmatprep.subr.bf16.mxu0 %v3845_v19 }
  0x57   : > { %3596 = vmatpush3.bf16.msra.mxu0 %v3595_v18 }
  0x58   : > { %3597 = vmatprep.subr.bf16.mxu0 %v3845_v19 }
  0x5b   : > { %3599 = vmatpush3.bf16.msra.mxu0 %v3598_v22  ;;  %v3037_v22 = vld [vmem:[%s4587_s1 + $0x140] sm:$0xff] }
  0x5c   : > { %3600 = vmatprep.subr.bf16.mxu0 %v3845_v19  ;;  %v3637_v24 = vpack.c.bf16 %v3038_v23, %v3037_v22 }
  0x5f   : > { %3603 = vmatpush3.bf16.msk.msra.mxu0 %vm4070_vm4, %v3601_v25 }
  0x60   : > { %3416 = vmatprep.subr.mxu0 %v3847_v27 }
  0x62   : > { %3395 = vmatmul.mubr.msk.f32.vlgmr.msra.gmra.mrb[4].mxu0 %vm594_vm0, %v4080_v43 }
  0x63   : > { %3418 = vmatprep.mubr.msk.f32.mxu0 %vm3846_vm1, %v3847_v27 }
 0x114   : > { %v758_v46 = vpop.f32.mrb[0].mxu1 }
 0x115   : > { %v759_v47 = vadd.f32 %v2961_v44, %v758_v46  ;;  %v668_v48 = vpop.f32.mrb[0].mxu0  ;;  %v3329_v49 = vpop.f32.mrb[1].mxu1  ;;  %v3003_v44 = vld [vmem:[%s4587_s1 + $0x1c0] sm:$0xff] }
 0x116   : > { %v669_v50 = vadd.f32 %v2949_v45, %v668_v48  ;;  %v3310_v51 = vpop.f32.mrb[1].mxu0  ;;  %v3004_v45 = vld [vmem:[%s4587_s1 + $0x1c8] sm:$0xff]  ;;  %v3006_v48 = vld [vmem:[%s4587_s1 + $0x1d8] sm:$0xff] }
 0x117   : > { %3350 = vmatpush3.xpose.msk.msra.mxu1 %vm853_vm5, %v759_v47  ;;  %v3605_v46 = vpack.c.bf16 %v3004_v45, %v3003_v44  ;;  %v3005_v47 = vld [vmem:[%s4587_s1 + $0x1d0] sm:$0xff]  ;;  %v3008_v51 = vld [vmem:[%s4587_s1 + $0x1e8] sm:$0xff]  ;;  %v3025_v44 = vld [vmem:[%s4587_s1 + $0x80] sm:$0xff] }
 0x118   : > { %v852_v52 = vmul.f32 0.2182179, %v669_v50  ;;  %3354 = vmatprep.subr.mxu1 %v3847_v27  ;;  %v3608_v49 = vpack.c.bf16 %v3006_v48, %v3005_v47  ;;  %v3007_v50 = vld [vmem:[%s4587_s1 + $0x1e0] sm:$0xff]  ;;  %v3026_v45 = vld [vmem:[%s4587_s1 + $0x88] sm:$0xff]  ;;  %v3027_v47 = vld [vmem:[%s4587_s1 + $0x90] sm:$0xff] }
 0x119   : > { %v3028_v48 = vld [vmem:[%s4587_s1 + $0x98] sm:$0xff] }
 0x11a   : > { %3352 = vmatmul.mubr.msk.f32.vlgmr.msra.gmra.mrb[2].mxu1 %vm853_vm5, %v852_v52  ;;  %v3611_v52 = vpack.c.bf16 %v3008_v51, %v3007_v50  ;;  %v3627_v51 = vpack.c.bf16 %v3028_v48, %v3027_v47 }
 0x11b   : > { %3356 = vmatprep.mubr.msk.f32.mxu1 %vm3846_vm1, %v3847_v27 }
 0x125   : > { %v848_v9 = vpop.f32.mrb[2].mxu0 }
 0x126   : > { %v3348_v11 = vpop.f32.mrb[3].mxu0  ;;  %v849_v14 = vadd.f32 %v2973_v10, %v848_v9 }
 0x128   : > { %3355 = vmatpush3.msra.mxu1 %v849_v14 }
 0x129   : > { %3578 = vmatprep.subr.bf16.mxu1 %v3845_v19 }
 0x135   : > { %v1194_v61 = vpop.f32.mrb[4].mxu0 }
 0x136   : > { %v1195_v62 = vadd.f32 %v3000_v60, %v1194_v61  ;;  %v3396_v63 = vpop.f32.mrb[5].mxu0 }
 0x138   : > { %3417 = vmatpush3.xpose.msk.msra.mxu0 %vm853_vm5, %v1195_v62 }
 0x139   : > { %3421 = vmatprep.subr.mxu0 %v3847_v27 }
 0x1ed   : > { %v926_v1 = vpop.f32.mrb[2].mxu1 }
 0x1ee   : > { %v3353_v2 = vpop.f32.mrb[3].mxu1  ;;  %v931_v3 = vsel %vm930_vm6, %v926_v1, -inf }
 0x1ef   : > { %932 = vmax.xlane.f32.xlu0 %v931_v3  ;;  %v2988_v2 = vld [vmem:[%s4588_s2 + $0x1] ss:$0 sm:$0xff] }
 0x27c   : > { %v933_v4 = vpop.xlane.xlu0 %932 }
 0x27d   : > { %v934_v5 = vsub.f32 %v926_v1, %v933_v4 }
 0x27f   : > { %v935_v6 = vmul.f32 1.442695, %v934_v5 }
 0x281   : > { %3719 = vpow2.f32 %v935_v6 }
 0x28b   : > { %v3720_v7 = vpop.eup %3719 }
 0x28c   : > { %v937_v8 = vsel %vm930_vm6, %v3720_v7, 0.0 }
 0x28d   : > { %938 = vadd.xlane.f32.xlu0 %v937_v8 }
 0x31a   : > { %v939_v26 = vpop.xlane.xlu0 %938 }
 0x31b   : > { %3721 = vrcp.f32 %v939_v26  ;;  %v3018_v26 = vld [vmem:[%s4589_s3 + $0x18] sm:$0xff] }
 0x325   : > { %v3722_v30 = vpop.eup %3721 }
 0x326   : > { %v941_v32 = vmul.f32 %v3722_v30, %v3720_v7  ;;  %v3012_v7 = vld [vmem:[%s4588_s2 + $0x7] ss:$0 sm:$0xff]  ;;  %v3618_v30 = vpack.c.bf16 %v3019_v28, %v3018_v26 }
 0x328   : > { %3357 = vmatmul.mubr.msk.f32.vlgmr.msra.gmra.mrb[4].mxu1 %vm930_vm6, %v941_v32  ;;  %v3020_v32 = vld [vmem:[%s4589_s3 + $0x28] sm:$0x1f] }
 0x329   : > { %3580 = vmatpush3.bf16.msra.mxu1 %v3579_v31  ;;  %3375 = vmatprep.mubr.msk.f32.mxu1 %vm3846_vm1, %v3847_v27 }
 0x32a   : > { %3581 = vmatprep.subr.bf16.mxu1 %v3845_v19 }
 0x32d   : > { %3583 = vmatpush3.bf16.msra.mxu1 %v3582_v35  ;;  %v3640_v35 = vpack.c.bf16 %v3040_v34, %v3039_v33  ;;  %v3065_v33 = vld [vmem:[%s4589_s3 + $0x38] sm:$0xff] }
 0x32e   : > { %3584 = vmatprep.subr.bf16.mxu1 %v3845_v19 }
 0x331   : > { %3586 = vmatpush3.bf16.msra.mxu1 %v3585_v38  ;;  %v3643_v38 = vpack.c.bf16 %v3042_v37, %v3041_v36 }
 0x332   : > { %3587 = vmatprep.subr.bf16.mxu1 %v3845_v19 }
 0x335   : > { %3590 = vmatpush3.bf16.msk.msra.mxu1 %vm4070_vm4, %v3588_v42  ;;  %v3646_v42 = vpack.c.bf16 %v3044_v40, %v3043_v39  ;;  %v3069_v40 = vld [vmem:[%s4590_s4] ss:$0 sm:$0xff] }
 0x336   : > { %3604 = vmatprep.subr.bf16.mxu1 %v3845_v19 }
 0x338   : > { %3376 = vmatmul.mubr.msk.f32.vlgmr.msra.gmra.mrb[6].mxu1 %vm594_vm0, %v4080_v43 }
 0x339   : > { %3606 = vmatpush3.bf16.msra.mxu1 %v3605_v46  ;;  %3413 = vmatprep.mubr.msk.f32.mxu1 %vm3846_vm1, %v3847_v27  ;;  %v3624_v46 = vpack.c.bf16 %v3026_v45, %v3025_v44 }
 0x33a   : > { %3607 = vmatprep.subr.bf16.mxu1 %v3845_v19 }
 0x33d   : > { %3609 = vmatpush3.bf16.msra.mxu1 %v3608_v49 }
 0x33e   : > { %3610 = vmatprep.subr.bf16.mxu1 %v3845_v19 }
 0x341   : > { %3612 = vmatpush3.bf16.msra.mxu1 %v3611_v52  ;;  %v3029_v52 = vld [vmem:[%s4587_s1 + $0xa0] sm:$0xff] }
 0x342   : > { %3613 = vmatprep.subr.bf16.mxu1 %v3845_v19  ;;  %v3630_v54 = vpack.c.bf16 %v3030_v53, %v3029_v52 }
 0x345   : > { %3616 = vmatpush3.bf16.msk.msra.mxu1 %vm4070_vm4, %v3614_v55  ;;  %v3031_v55 = vld [vmem:[%s4587_s1 + $0xb0] sm:$0xff] }
 0x346   : > { %3620 = vmatprep.subr.bf16.mxu1 %v3845_v19  ;;  %v3633_v57 = vpack.c.bf16 %v3032_v56, %v3031_v55 }
 0x348   : > { %3414 = vmatmul.mubr.msk.f32.vlgmr.msra.gmra.mrb[8].mxu1 %vm594_vm0, %v4080_v43 }
 0x349   : > { %3622 = vmatpush3.bf16.msra.mxu1 %v3621_v58  ;;  %3441 = vmatprep.mubr.msk.f32.mxu1 %vm3846_vm1, %v3847_v27  ;;  %v3046_v58 = vld [vmem:[%s4588_s2 + $0x5] ss:$0 sm:$0xff] }
 0x34a   : > { %3439 = vmatprep.subr.mxu1 %v3847_v27 }
 0x34d   : > { %3440 = vmatpush3.msk.msra.mxu1 %vm1456_vm7, %v1017_v59 }
 0x34e   : > { %3636 = vmatprep.subr.bf16.mxu1 %v3845_v19 }
 0x3fb   : > { %v1011_v0 = vpop.f32.mrb[4].mxu1 }
 0x3fc   : > { %v3358_v1 = vpop.f32.mrb[5].mxu1  ;;  %3442 = vmatmul.mubr.msk.f32.vlgmr.msra.gmra.mrb[10].mxu1 %vm853_vm5, %v1011_v0 }
 0x3fd   : > { %3479 = vmatprep.mubr.msk.f32.mxu1 %vm3846_vm1, %v3847_v27  ;;  %3638 = vmatpush3.bf16.msra.mxu1 %v3637_v24  ;;  %v3034_v1 = vld [vmem:[%s4588_s2 + $0x2] ss:$0 sm:$0xff] }
 0x3fe   : > { %3639 = vmatprep.subr.bf16.mxu1 %v3845_v19 }
 0x401   : > { %3641 = vmatpush3.bf16.msra.mxu1 %v3640_v35 }
 0x402   : > { %3642 = vmatprep.subr.bf16.mxu1 %v3845_v19 }
 0x405   : > { %3644 = vmatpush3.bf16.msra.mxu1 %v3643_v38 }
 0x406   : > { %3645 = vmatprep.subr.bf16.mxu1 %v3845_v19 }
 0x409   : > { %3648 = vmatpush3.bf16.msk.msra.mxu1 %vm4070_vm4, %v3646_v42 }
 0x40a   : > { %3501 = vmatprep.subr.mxu1 %v3847_v27 }
 0x40b   : > { %v1104_v3 = vpop.f32.mrb[6].mxu1 }
 0x40c   : > { %v1105_v4 = vadd.f32 %v2988_v2, %v1104_v3  ;;  %v3377_v5 = vpop.f32.mrb[7].mxu1  ;;  %3480 = vmatmul.mubr.msk.f32.vlgmr.msra.gmra.mrb[12].mxu1 %vm594_vm0, %v4080_v43 }
 0x40d   : > { %3503 = vmatprep.mubr.msk.f32.mxu1 %vm3846_vm1, %v3847_v27 }
 0x40e   : > { %v1288_v6 = vmul.f32 0.2182179, %v1105_v4 }
 0x410   : > { %3419 = vmatmul.mubr.msk.f32.vlgmr.msra.gmra.mrb[6].mxu0 %vm853_vm5, %v1288_v6  ;;  %v3049_v6 = vld [vmem:[%s4587_s1 + $0x200] sm:$0xff] }
 0x411   : > { %3423 = vmatprep.mubr.msk.f32.mxu0 %vm3846_vm1, %v3847_v27 }
 0x41b   : > { %v1284_v8 = vpop.f32.mrb[8].mxu1 }
 0x41c   : > { %v1285_v9 = vadd.f32 %v3012_v7, %v1284_v8  ;;  %v3415_v10 = vpop.f32.mrb[9].mxu1  ;;  %v3050_v7 = vld [vmem:[%s4587_s1 + $0x208] sm:$0xff]  ;;  %v3051_v8 = vld [vmem:[%s4587_s1 + $0x210] sm:$0xff] }
 0x41d   : > { %v3052_v10 = vld [vmem:[%s4587_s1 + $0x218] sm:$0xff] }
 0x41e   : > { %3422 = vmatpush3.msra.mxu0 %v1285_v9  ;;  %v3650_v9 = vpack.c.bf16 %v3050_v7, %v3049_v6 }
 0x41f   : > { %3617 = vmatprep.subr.bf16.mxu0 %v3845_v19 }
 0x4cf   : > { %v4280_v11 = vpop.f32.mrb[10].mxu1 }
 0x4d0   : > { %v3443_v12 = vpop.f32.mrb[11].mxu1 }
 0x4d1   : > { %v3053_v12 = vld [vmem:[%s4587_s1 + $0x220] sm:$0xff] }
 0x4df   : > { %v1782_v59 = vpop.f32.mrb[12].mxu1 }
 0x4e0   : > { %v1783_v60 = vadd.f32 %v3046_v58, %v1782_v59  ;;  %v3481_v61 = vpop.f32.mrb[13].mxu1  ;;  %v3071_v59 = vld [vmem:[%s4592_s6] ss:$0 sm:$0xff] }
 0x4e2   : > { %3502 = vmatpush3.xpose.msk.msra.mxu1 %vm853_vm5, %v1783_v60 }
 0x4e3   : > { %v1361_v13 = vpop.f32.mrb[6].mxu0  ;;  %3506 = vmatprep.subr.mxu1 %v3847_v27 }
 0x4e4   : > { %v3420_v14 = vpop.f32.mrb[7].mxu0  ;;  %v1365_v15 = vsel %vm930_vm6, %v1361_v13, -inf }
 0x4e5   : > { %1366 = vmax.xlane.f32.xlu1 %v1365_v15  ;;  %v3055_v15 = vld [vmem:[%s4587_s1 + $0x230] sm:$0xff] }
 0x572   : > { %v1367_v16 = vpop.xlane.xlu1 %1366 }
 0x573   : > { %v1368_v17 = vsub.f32 %v1361_v13, %v1367_v16  ;;  %v3054_v13 = vld [vmem:[%s4587_s1 + $0x228] sm:$0xff]  ;;  %v3056_v16 = vld [vmem:[%s4587_s1 + $0x238] sm:$0x7f] }
 0x574   : > { %v3656_v14 = vpack.c.bf16 %v3054_v13, %v3053_v12 }
 0x575   : > { %v1369_v18 = vmul.f32 1.442695, %v1368_v17  ;;  %v3659_v17 = vpack.c.bf16 %v3056_v16, %v3055_v15 }
 0x577   : > { %3723 = vpow2.f32 %v1369_v18 }
 0x581   : > { %v3724_v20 = vpop.eup %3723 }
 0x582   : > { %v1371_v21 = vsel %vm930_vm6, %v3724_v20, 0.0 }
 0x583   : > { %1372 = vadd.xlane.f32.xlu1 %v1371_v21 }
 0x610   : > { %v1373_v25 = vpop.xlane.xlu1 %1372 }
 0x611   : > { %3725 = vrcp.f32 %v1373_v25 }
 0x61b   : > { %v3726_v29 = vpop.eup %3725 }
 0x61c   : > { %v1375_v31 = vmul.f32 %v3726_v29, %v3724_v20 }
 0x61e   : > { %3424 = vmatmul.mubr.msk.f32.vlgmr.msra.gmra.mrb[8].mxu0 %vm930_vm6, %v1375_v31 }
 0x61f   : > { %3619 = vmatpush3.bf16.msra.mxu0 %v3618_v30  ;;  %3432 = vmatprep.mubr.msk.f32.mxu0 %vm3846_vm1, %v3847_v27 }
 0x620   : > { %3430 = vmatprep.subr.mxu0 %v3847_v27 }
 0x623   : > { %3431 = vmatpush3.msk.msra.mxu0 %vm1456_vm7, %v3020_v32  ;;  %v3064_v32 = vld [vmem:[%s4589_s3 + $0x30] sm:$0xff] }
 0x624   : > { %3623 = vmatprep.subr.bf16.mxu0 %v3845_v19  ;;  %v3663_v35 = vpack.c.bf16 %v3065_v33, %v3064_v32 }
 0x6f1   : > { %v1445_v49 = vpop.f32.mrb[8].mxu0 }
 0x6f2   : > { %v3425_v50 = vpop.f32.mrb[9].mxu0  ;;  %3433 = vmatmul.mubr.msk.f32.vlgmr.msra.gmra.mrb[10].mxu0 %vm853_vm5, %v1445_v49 }
 0x6f3   : > { %3625 = vmatpush3.bf16.msra.mxu0 %v3624_v46  ;;  %3460 = vmatprep.mubr.msk.f32.mxu0 %vm3846_vm1, %v3847_v27 }
 0x6f4   : > { %3626 = vmatprep.subr.bf16.mxu0 %v3845_v19 }
 0x6f7   : > { %3628 = vmatpush3.bf16.msra.mxu0 %v3627_v51 }
 0x6f8   : > { %3629 = vmatprep.subr.bf16.mxu0 %v3845_v19 }
 0x6fb   : > { %3631 = vmatpush3.bf16.msra.mxu0 %v3630_v54 }
 0x6fc   : > { %3632 = vmatprep.subr.bf16.mxu0 %v3845_v19 }
 0x6ff   : > { %3635 = vmatpush3.bf16.msk.msra.mxu0 %vm4070_vm4, %v3633_v57 }
 0x700   : > { %3649 = vmatprep.subr.bf16.mxu0 %v3845_v19 }
 0x702   : > { %3461 = vmatmul.mubr.msk.f32.vlgmr.msra.gmra.mrb[12].mxu0 %vm594_vm0, %v4080_v43 }
 0x703   : > { %3498 = vmatprep.mubr.msk.f32.mxu0 %vm3846_vm1, %v3847_v27  ;;  %3651 = vmatpush3.bf16.msra.mxu0 %v3650_v9 }
 0x704   : > { %3652 = vmatprep.subr.bf16.mxu0 %v3845_v19 }
 0x7c5   : > { %v1526_v62 = vpop.f32.mrb[10].mxu0 }
 0x7c6   : > { %v4376_v63 = vadd.f32 %v4280_v11, %v1526_v62  ;;  %v3434_v0 = vpop.f32.mrb[11].mxu0  ;;  %v3653_v11 = vpack.c.bf16 %v3052_v10, %v3051_v8 }
 0x7c8   : > { %3654 = vmatpush3.bf16.msra.mxu0 %v3653_v11 }
 0x7c9   : > { %3655 = vmatprep.subr.bf16.mxu0 %v3845_v19 }
 0x7cc   : > { %3657 = vmatpush3.bf16.msra.mxu0 %v3656_v14 }
 0x7cd   : > { %3658 = vmatprep.subr.bf16.mxu0 %v3845_v19 }
 0x7d0   : > { %3661 = vmatpush3.bf16.msk.msra.mxu0 %vm4070_vm4, %v3659_v17 }
 0x7d3   : > { %3499 = vmatmul.mubr.msk.f32.vlgmr.msra.gmra.mrb[14].mxu0 %vm594_vm0, %v4080_v43 }
 0x7d5   : > { %v1692_v2 = vpop.f32.mrb[12].mxu0 }
 0x7d6   : > { %v1693_v3 = vadd.f32 %v3034_v1, %v1692_v2  ;;  %v3462_v4 = vpop.f32.mrb[13].mxu0 }
 0x7d8   : > { %v1876_v5 = vmul.f32 0.2182179, %v1693_v3 }
 0x7da   : > { %3504 = vmatmul.mubr.msk.f32.vlgmr.msra.gmra.mrb[14].mxu1 %vm853_vm5, %v1876_v5 }
 0x7db   : > { %3508 = vmatprep.mubr.msk.f32.mxu1 %vm3846_vm1, %v3847_v27 }
 0x8a6   : > { %v1872_v28 = vpop.f32.mrb[14].mxu0 }
 0x8a7   : > { %v3500_v29 = vpop.f32.mrb[15].mxu0  ;;  %v1873_v30 = vadd.f32 %v3058_v41, %v1872_v28 }
 0x8a9   : > { %3507 = vmatpush3.msra.mxu1 %v1873_v30 }
 0x8aa   : > { %3662 = vmatprep.subr.bf16.mxu1 %v3845_v19  ;;  %v3066_v19 = vld [vmem:[%s4589_s3 + $0x40] sm:$0x1f] }
 0x8ad   : > { %v1949_v18 = vpop.f32.mrb[14].mxu1 }
 0x8ae   : > { %v3505_v20 = vpop.f32.mrb[15].mxu1  ;;  %v1953_v21 = vsel %vm930_vm6, %v1949_v18, -inf }
 0x8af   : > { %1954 = vmax.xlane.f32.xlu0 %v1953_v21 }
 0x93c   : > { %v1955_v22 = vpop.xlane.xlu0 %1954 }
 0x93d   : > { %v1956_v23 = vsub.f32 %v1949_v18, %v1955_v22 }
 0x93f   : > { %v1957_v24 = vmul.f32 1.442695, %v1956_v23 }
 0x941   : > { %3727 = vpow2.f32 %v1957_v24 }
 0x94b   : > { %v3728_v25 = vpop.eup %3727 }
 0x94c   : > { %v1959_v26 = vsel %vm930_vm6, %v3728_v25, 0.0 }
 0x94d   : > { %1960 = vadd.xlane.f32.xlu1 %v1959_v26 }
 0x9da   : > { %v1961_v31 = vpop.xlane.xlu1 %1960 }
 0x9db   : > { %3729 = vrcp.f32 %v1961_v31 }
 0x9e5   : > { %v3730_v34 = vpop.eup %3729 }
 0x9e6   : > { %v1963_v36 = vmul.f32 %v3730_v34, %v3728_v25 }
 0x9e8   : > { %3509 = vmatmul.mubr.msk.f32.vlgmr.msra.gmra.mrb[16].mxu1 %vm930_vm6, %v1963_v36 }
 0x9e9   : > { %3664 = vmatpush3.bf16.msra.mxu1 %v3663_v35  ;;  %3517 = vmatprep.mubr.msk.f32.mxu1 %vm3846_vm1, %v3847_v27 }
 0x9ea   : > { %3515 = vmatprep.subr.mxu1 %v3847_v27 }
 0x9ed   : > { %3516 = vmatpush3.msk.msra.mxu1 %vm1456_vm7, %v3066_v19 }
 0xabb   : > { %v2033_v37 = vpop.f32.mrb[16].mxu1 }
 0xabc   : > { %v3510_v38 = vpop.f32.mrb[17].mxu1  ;;  %3518 = vmatmul.mubr.msk.f32.vlgmr.msra.gmra.mrb[18].mxu1 %vm853_vm5, %v2033_v37 }
 0xb8f   : > { %v2113_v39 = vpop.f32.mrb[18].mxu1 }
 0xb90   : > { %v2117_v42 = vadd.f32 %v2113_v39, %v4376_v63  ;;  %v3519_v44 = vpop.f32.mrb[19].mxu1 }
 0xb92   : > { %v2125_v45 = vadd.f32 %v3069_v40, %v2117_v42 }
 0xb94   : > { %v2126_v27 = vadd.f32 %v2125_v45, %v4080_v43  ;;  %v3070_v43 = vld [vmem:[%s4591_s5] ss:$0 sm:$0xff] }
 0xb96   : > { %v2129_v46 = vsel %vm594_vm0, %v2126_v27, 0.0  ;;  %v2134_v47 = vmul.f32 %v2126_v27, %v2126_v27 }
 0xb97   : > { %2130 = vadd.xlane.f32.xlu0 %v2129_v46 }
 0xb98   : > { %v2135_v48 = vsel %vm594_vm0, %v2134_v47, 0.0 }
 0xb99   : > { %2136 = vadd.xlane.f32.xlu1 %v2135_v48 }
 0xc24   : > { %v2131_v49 = vpop.xlane.xlu0 %2130 }
 0xc25   : > { %v2133_v50 = vmul.f32 0.015873017, %v2131_v49 }
 0xc26   : > { %v2137_v51 = vpop.xlane.xlu1 %2136 }
 0xc27   : > { %v2139_v52 = vmul.f32 %v2133_v50, %v2133_v50  ;;  %v2138_v53 = vmul.f32 0.015873017, %v2137_v51  ;;  %v2141_v56 = vsub.f32 %v2126_v27, %v2133_v50 }
 0xc29   : > { %v2140_v54 = vsub.f32 %v2138_v53, %v2139_v52 }
 0xc2b   : > { %v2142_v55 = vadd.f32 1e-05, %v2140_v54 }
 0xc2d   : > { %3731 = vrsqrt.f32 %v2142_v55 }
 0xc37   : > { %v3732_v57 = vpop.eup %3731 }
 0xc38   : > { %v2144_v58 = vmul.f32 %v3732_v57, %v2141_v56 }
 0xc3a   : > { %v2151_v60 = vmul.f32 %v3070_v43, %v2144_v58 }
 0xc3c   : > { %v2158_v61 = vadd.f32 %v3071_v59, %v2151_v60 }
 0xc3e   : > { %2159 = vst.msk [vmem:[#allocation2] sm:$0xff] %vm594_vm0, %v2158_v61 }
 0xc3f PF: > { %v3733_v62 = vld [vmem:[%s4006_s18 + $0x4] ss:$16 sps:$4 sm:$0xff]   ;;  %vm2281_vm8 = vcmask 1046528   ;;  %v3735_v63 = vld [vmem:[%s4006_s18 + $0xc] ss:$16 sps:$4 sm:$0xff]   ;;  %v3849_v2 = vmov 0   ;;  %v2181_v57 = vlaneseq }
 0xc40   : > { %2297 = vmatprep.subr.bf16.mxu0 %v3733_v62  ;;  %v3737_v0 = vld [vmem:[%s4006_s18] ss:$16 sps:$4 sm:$0xff]   ;;  %v3738_v1 = vld [vmem:[%s4006_s18 + $0x8] ss:$16 sps:$4 sm:$0xff]   ;;  %2329 = vmatprep.mubr.bf16.mxu0 %v3849_v2  ;;  %v3739_v3 = vld [vmem:[%s4006_s18 + $0x24] ss:$16 sps:$4 sm:$0xff]  }
 0xc41   : > { %2338 = vmatprep.subr.bf16.mxu1 %v3735_v63  ;;  %vm2282_vm9 = vcmask 1047552   ;;  %v3850_v4 = vmov 65535   ;;  %2370 = vmatprep.mubr.bf16.mxu1 %v3849_v2  ;;  %v3741_v6 = vld [vmem:[%s4006_s18 + $0x2c] ss:$16 sps:$4 sm:$0xff]   ;;  %v3743_v7 = vld [vmem:[%s4006_s18 + $0x20] ss:$16 sps:$4 sm:$0xff]  }
 0xc42   : > { %v2283_v5 = vsel %vm2281_vm8, 4294967295, %v3850_v4  ;;  %2298 = vmatpush1.bf16.msra.mxu0 %v3737_v0  ;;  %2339 = vmatpush1.bf16.msra.mxu1 %v3738_v1  ;;  %v3744_v8 = vld [vmem:[%s4006_s18 + $0x28] ss:$16 sps:$4 sm:$0xff]   ;;  %v3745_v9 = vld [vmem:[%s4006_s18 + $0x44] ss:$16 sps:$4 sm:$0xff]   ;;  %vm2277_vm10 = vcmask 515072  }
 0xc43   : > { %2299 = vmatprep.subr.bf16.mxu0 %v3739_v3  ;;  %2340 = vmatprep.subr.bf16.mxu1 %v3741_v6  ;;  %v2284_v10 = vsel %vm2282_vm9, %v2283_v5, 0  ;;  %v3747_v11 = vld [vmem:[%s4006_s18 + $0x4c] ss:$16 sps:$4 sm:$0xff]   ;;  %v3749_v12 = vld [vmem:[%s4006_s18 + $0x40] ss:$16 sps:$4 sm:$0xff]   ;;  %v2182_v43 = vshrl.u32 %v2181_v57, 7 }
 0xc44   : > { %v3750_v13 = vld [vmem:[%s4006_s18 + $0x48] ss:$16 sps:$4 sm:$0xff]   ;;  %v3751_v14 = vld [vmem:[%s4006_s18 + $0x64] ss:$16 sps:$4 sm:$0xff]   ;;  %v3753_v15 = vld [vmem:[%s4006_s18 + $0x6c] ss:$16 sps:$4 sm:$0xff]  }
 0xc45   : > { %v2289_v16 = vand.u32 %v3751_v14, %v2284_v10  ;;  %v3755_v17 = vld [vmem:[%s4006_s18 + $0x60] ss:$16 sps:$4 sm:$0xff]   ;;  %v3756_v18 = vld [vmem:[%s4006_s18 + $0x68] ss:$16 sps:$4 sm:$0xff]   ;;  %v2295_v20 = vand.u32 %v3753_v15, %v2284_v10  ;;  %v2183_v58 = vsub.s32 0, %v2182_v43  ;;  %v2191_v59 = vsub.s32 2, %v2182_v43 }
 0xc46   : > { %2300 = vmatpush1.bf16.msra.mxu0 %v3743_v7  ;;  %2341 = vmatpush1.bf16.msra.mxu1 %v3744_v8  ;;  %v4467_v21 = vld [vmem:[#allocation2] sm:$0xff]  ;;  %v2286_v22 = vand.u32 %v3755_v17, %v2284_v10  ;;  %v2292_v23 = vand.u32 %v3756_v18, %v2284_v10  ;;  %v3761_v29 = vld [vmem:[%s4004_s7 + $0x48] sm:$0xff]   ;;  %v3765_v33 = vld [vmem:[%s4004_s7 + $0x50] sm:$0xff]   ;;  %v2187_v61 = vsub.s32 1, %v2182_v43  ;;  %v2195_v62 = vsub.s32 3, %v2182_v43  ;;  %p3122_p11 = scmp.ne.s32.totalorder %s3952_s21, 3 }
 0xc47   : > { %2301 = vmatprep.subr.bf16.mxu0 %v3745_v9  ;;  %2342 = vmatprep.subr.bf16.mxu1 %v3747_v11  ;;  %v3757_v24 = vld [vmem:[%s4004_s7 + $0x40] sm:$0xff]   ;;  %v2162_v28 = vpack.c.bf16 %v4467_v21, %v4467_v21  ;;  %v3762_v30 = vld [vmem:[%s4004_s7 + $0xc8] sm:$0xff]   ;;  %v3766_v34 = vld [vmem:[%s4004_s7 + $0xd0] sm:$0xff]   ;;  %vm3852_vm11 = vmmov (!%p3122_p11), 0   ;;  %vm3854_vm12 = vmmov (!%p3122_p11), 1  }
 0xc48   : > { %v3758_v25 = vld [vmem:[%s4004_s7 + $0xc0] sm:$0xff]   ;;  %v3763_v31 = vld [vmem:[%s4004_s7 + $0x8] sm:$0xff]   ;;  %v3767_v35 = vld [vmem:[%s4004_s7 + $0x10] sm:$0xff]  }
 0xc49   : > { %v3759_v26 = vld [vmem:[%s4004_s7] sm:$0xff]   ;;  %v3764_v32 = vld [vmem:[%s4004_s7 + $0x88] sm:$0xff]   ;;  %v3768_v36 = vld [vmem:[%s4004_s7 + $0x90] sm:$0xff]  }
 0xc4a   : > { %2302 = vmatpush1.bf16.msra.mxu0 %v3749_v12  ;;  %2343 = vmatpush1.bf16.msra.mxu1 %v3750_v13  ;;  %v3760_v41 = vld [vmem:[%s4004_s7 + $0x80] sm:$0xff]   ;;  %v3769_v19 = vld [vmem:[%s4004_s7 + $0x58] sm:$0xff]   ;;  %v3777_v27 = vld [vmem:[%s4004_s7 + $0x68] sm:$0xff]  }
 0xc4b   : > { %2303 = vmatprep.subr.bf16.mxu0 %v2289_v16  ;;  %2344 = vmatprep.subr.bf16.mxu1 %v2295_v20  ;;  %v3770_v37 = vld [vmem:[%s4004_s7 + $0xd8] sm:$0xff]   ;;  %v3773_v40 = vld [vmem:[%s4004_s7 + $0x60] sm:$0xff]   ;;  %v3778_v46 = vld [vmem:[%s4004_s7 + $0xe8] sm:$0xff]  }
 0xc4c   : > { %v3771_v38 = vld [vmem:[%s4004_s7 + $0x18] sm:$0xff]   ;;  %v3774_v42 = vld [vmem:[%s4004_s7 + $0xe0] sm:$0xff]   ;;  %v3779_v47 = vld [vmem:[%s4004_s7 + $0x28] sm:$0xff]  }
 0xc4d   : > { %v3772_v39 = vld [vmem:[%s4004_s7 + $0x98] sm:$0xff]   ;;  %v3775_v44 = vld [vmem:[%s4004_s7 + $0x20] sm:$0xff]   ;;  %v3780_v48 = vld [vmem:[%s4004_s7 + $0xa8] sm:$0xff]  }
 0xc4e   : > { %2304 = vmatpush1.bf16.msra.mxu0 %v2286_v22  ;;  %2345 = vmatpush1.bf16.msra.mxu1 %v2292_v23  ;;  %v3776_v45 = vld [vmem:[%s4004_s7 + $0xa0] sm:$0xff]   ;;  %v3781_v49 = vld [vmem:[%s4004_s7 + $0x70] sm:$0xff]   ;;  %v3785_v53 = vld [vmem:[%s4004_s7 + $0x78] sm:$0xff]  }
 0xc4f   : > { %3239 = vmatprep.subr.bf16.mxu0 %v3757_v24  ;;  %3261 = vmatprep.subr.bf16.mxu1 %v3758_v25  ;;  %v3782_v50 = vld [vmem:[%s4004_s7 + $0xf0] sm:$0xff]   ;;  %v3786_v54 = vld [vmem:[%s4004_s7 + $0xf8] sm:$0xff]   ;;  %v2179_v60 = vld [vmem:[%s565_s30] sm:$0xf] }
 0xc50   : > { %v3783_v51 = vld [vmem:[%s4004_s7 + $0x30] sm:$0xff]   ;;  %v3787_v55 = vld [vmem:[%s4004_s7 + $0x38] sm:$0xff]   ;;  %v2184_v63 = vrot.slane %v2179_v60, %v2183_v58  ;;  %v2192_v0 = vrot.slane %v2179_v60, %v2191_v59  ;;  %v2188_v1 = vrot.slane %v2179_v60, %v2187_v61  ;;  %v2196_v2 = vrot.slane %v2179_v60, %v2195_v62  ;;  %vm3676_vm13 = vmpackc.low (!%p3122_p11), %vm2281_vm8, %vm3854_vm12 }
 0xc51   : > { %3088 = vmatmul.mubr.msk.bf16.vlgmr.msra.gmra.mrb[0].mxu0 %vm2277_vm10, %v2162_v28  ;;  %3089 = vmatmul.mubr.msk.bf16.vlgmr.msra.gmra.mrb[0].mxu1 %vm2277_vm10, %v2162_v28  ;;  %v3784_v52 = vld [vmem:[%s4004_s7 + $0xb0] sm:$0xff]   ;;  %v3788_v56 = vld [vmem:[%s4004_s7 + $0xb8] sm:$0xff]  }
 0xc52   : > { %3240 = vmatpush3.bf16.msra.mxu0 %v3759_v26  ;;  %3262 = vmatpush3.bf16.msra.mxu1 %v3760_v41 }
 0xc53   : > { %3241 = vmatprep.subr.bf16.mxu0 %v3761_v29  ;;  %3263 = vmatprep.subr.bf16.mxu1 %v3762_v30 }
 0xc56   : > { %3242 = vmatpush3.bf16.msra.mxu0 %v3763_v31  ;;  %3264 = vmatpush3.bf16.msra.mxu1 %v3764_v32 }
 0xc57   : > { %3243 = vmatprep.subr.bf16.mxu0 %v3765_v33  ;;  %3265 = vmatprep.subr.bf16.mxu1 %v3766_v34  ;;  %v2383_v33 = vld [vmem:[#allocation3] sm:$0xff] }
 0xc5a   : > { %3244 = vmatpush3.bf16.msra.mxu0 %v3767_v35  ;;  %3266 = vmatpush3.bf16.msra.mxu1 %v3768_v36 }
 0xc5b   : > { %3245 = vmatprep.subr.bf16.mxu0 %v3769_v19  ;;  %3267 = vmatprep.subr.bf16.mxu1 %v3770_v37 }
 0xc5e   : > { %3246 = vmatpush3.bf16.msra.mxu0 %v3771_v38  ;;  %3268 = vmatpush3.bf16.msra.mxu1 %v3772_v39  ;;  %v3123_v38 = vld [vmem:[%s4596_s10] ss:$0 sm:$0xff] (!%p3122_p11) }
 0xc5f   : > { %3247 = vmatprep.subr.bf16.mxu0 %v3773_v40  ;;  %3269 = vmatprep.subr.bf16.mxu1 %v3774_v42 }
 0xc62   : > { %3248 = vmatpush3.bf16.msra.mxu0 %v3775_v44  ;;  %3270 = vmatpush3.bf16.msra.mxu1 %v3776_v45 }
 0xc63   : > { %3249 = vmatprep.subr.bf16.mxu0 %v3777_v27  ;;  %3271 = vmatprep.subr.bf16.mxu1 %v3778_v46  ;;  %v2772_v27 = vld [vmem:[%s4599_s13] sm:$0xff] (!%p3122_p11)  ;;  %v2773_v46 = vld [vmem:[%s4599_s13 + $0x8] sm:$0xff] (!%p3122_p11) }
 0xc66   : > { %3250 = vmatpush3.bf16.msra.mxu0 %v3779_v47  ;;  %3272 = vmatpush3.bf16.msra.mxu1 %v3780_v48  ;;  %v3666_v47 = vpack.c.bf16 (!%p3122_p11), %v2773_v46, %v2772_v27  ;;  %v2775_v48 = vld [vmem:[%s4599_s13 + $0x18] sm:$0xff] (!%p3122_p11) }
 0xc67   : > { %3251 = vmatprep.subr.bf16.mxu0 %v3781_v49  ;;  %3273 = vmatprep.subr.bf16.mxu1 %v3782_v50  ;;  %v3851_v49 = vmov (!%p3122_p11), 0.0|0.0  }
 0xc6a   : > { %3252 = vmatpush3.bf16.msra.mxu0 %v3783_v51  ;;  %3274 = vmatpush3.bf16.msra.mxu1 %v3784_v52  ;;  %v3853_v51 = vmov (!%p3122_p11), 0.0   ;;  %v2776_v52 = vld [vmem:[%s4599_s13 + $0x20] sm:$0xff] (!%p3122_p11) }
 0xc6b   : > { %3253 = vmatprep.subr.bf16.mxu0 %v3785_v53  ;;  %3275 = vmatprep.subr.bf16.mxu1 %v3786_v54  ;;  %v2777_v53 = vld [vmem:[%s4599_s13 + $0x28] sm:$0xff] (!%p3122_p11) }
 0xc6c   : > { %v3672_v54 = vpack.c.bf16 (!%p3122_p11), %v2777_v53, %v2776_v52 }
 0xc6e   : > { %3254 = vmatpush3.bf16.msra.mxu0 %v3787_v55  ;;  %3276 = vmatpush3.bf16.msra.mxu1 %v3788_v56  ;;  %v2778_v55 = vld [vmem:[%s4599_s13 + $0x30] sm:$0xff] (!%p3122_p11)  ;;  %v2779_v56 = vld [vmem:[%s4599_s13 + $0x38] sm:$0x7f] (!%p3122_p11) }
 0xc6f   : > { %3665 = vmatprep.subr.bf16.mxu0 (!%p3122_p11), %v3851_v49  ;;  %v3675_v57 = vpack.c.bf16 (!%p3122_p11), %v2779_v56, %v2778_v55 }
 0xd24   : > { %v2331_v3 = vpop.f32.mrb[0].mxu0  ;;  %v2372_v4 = vpop.f32.mrb[0].mxu1 }
 0xd25   : > { %v2332_v5 = vadd.f32 %v2331_v3, %v2184_v63  ;;  %v2373_v6 = vadd.f32 %v2372_v4, %v2192_v0  ;;  %v2333_v7 = vpop.f32.mrb[1].mxu0  ;;  %v2374_v8 = vpop.f32.mrb[1].mxu1  ;;  %v3125_v4 = vld [vmem:[%s4598_s12] ss:$0 sm:$0xff] (!%p3122_p11) }
 0xd26   : > { %v2334_v9 = vadd.f32 %v2333_v7, %v2188_v1  ;;  %v2375_v10 = vadd.f32 %v2374_v8, %v2196_v2  ;;  %v2335_v11 = vpop.f32.mrb[2].mxu0  ;;  %v2376_v12 = vpop.f32.mrb[2].mxu1  ;;  %v3124_v2 = vld [vmem:[%s4597_s11] ss:$0 sm:$0xff] (!%p3122_p11) }
 0xd27   : > { %v2379_v13 = vmax.f32 %v2332_v5, 0.0  ;;  %v2381_v14 = vmax.f32 %v2373_v6, 0.0  ;;  %v2336_v15 = vpop.f32.mrb[3].mxu0  ;;  %v2377_v16 = vpop.f32.mrb[3].mxu1  ;;  %v3126_v7 = vld [vmem:[%s4600_s14] ss:$0 sm:$0xff] (!%p3122_p11) }
 0xd28   : > { %v2380_v17 = vmax.f32 %v2334_v9, 0.0  ;;  %v2382_v18 = vmax.f32 %v2375_v10, 0.0 }
 0xd29   : > { %v2384_v23 = vpack.c.bf16 %v2379_v13, %v2379_v13  ;;  %v2386_v24 = vpack.c.bf16 %v2381_v14, %v2381_v14 }
 0xd2a   : > { %v2385_v20 = vpack.c.bf16 %v2380_v17, %v2380_v17  ;;  %v2387_v22 = vpack.c.bf16 %v2382_v18, %v2382_v18 }
 0xd2c   : > { %2676 = vmatprep.mubr.bf16.mxu0 %v2385_v20  ;;  %2716 = vmatprep.mubr.bf16.mxu1 %v2387_v22 }
 0xd2d   : > { %2677 = vmatmul.mubr.bf16.vlgmr.msra.gmra.mrb[4].mxu0 %v2384_v23  ;;  %2717 = vmatmul.mubr.bf16.vlgmr.msra.gmra.mrb[4].mxu1 %v2386_v24 }
 0xd2e   : > { %3667 = vmatpush3.bf16.msra.mxu0 (!%p3122_p11), %v3666_v47  ;;  %3536 = vmatprep.mubr.msk.f32.mxu0 (!%p3122_p11), %vm3852_vm11, %v3853_v51 }
 0xd2f   : > { %3668 = vmatprep.subr.bf16.mxu0 (!%p3122_p11), %v3851_v49 }
 0xe00   : > { %v3255_v25 = vpop.f32.mrb[4].mxu0  ;;  %v3277_v26 = vpop.f32.mrb[4].mxu1 }
 0xe01   : > { %v3256_v28 = vpop.f32.mrb[5].mxu0  ;;  %v3278_v41 = vpop.f32.mrb[5].mxu1 }
 0xe02   : > { %v3257_v29 = vadd.f32 %v3256_v28, %v3255_v25  ;;  %v3279_v30 = vadd.f32 %v3278_v41, %v3277_v26  ;;  %v3258_v31 = vpop.f32.mrb[6].mxu0  ;;  %v3280_v32 = vpop.f32.mrb[6].mxu1  ;;  %2729 = sbr.rel (%p3122_p11) target bundleno = 3989 (0xf95), region = 111 }
 0xe03   : > { %v3259_v34 = vpop.f32.mrb[7].mxu0  ;;  %v3281_v35 = vpop.f32.mrb[7].mxu1 }
 0xe04   : > { %v2719_v36 = vadd.f32 %v3279_v30, %v3257_v29 }
 0xe06   : > { %v2724_v19 = vadd.f32 %v2719_v36, %v2383_v33 }
 0xe08   : > { %2725 = vst.msk [vmem:[#allocation3] sm:$0xff] %vm2277_vm10, %v2724_v19 }
 0xe0f   : > { %v2730_v37 = vld [vmem:[#allocation3] sm:$0xff] }
 0xe10   : > { %v2731_v39 = vadd.f32 %v2730_v37, %v4467_v21  ;;  %v2774_v21 = vld [vmem:[%s4599_s13 + $0x10] sm:$0xff] }
 0xe11   : > { %v3669_v50 = vpack.c.bf16 %v2775_v48, %v2774_v21 }
 0xe12   : > { %v2739_v40 = vadd.f32 %v3123_v38, %v2731_v39 }
 0xe13   : > { %3670 = vmatpush3.bf16.msra.mxu0 %v3669_v50 }
 0xe14   : > { %v2742_v42 = vsel %vm2277_vm10, %v2739_v40, 0.0  ;;  %v2747_v44 = vmul.f32 %v2739_v40, %v2739_v40  ;;  %3671 = vmatprep.subr.bf16.mxu0 %v3851_v49 }
 0xe15   : > { %2743 = vadd.xlane.f32.xlu0 %v2742_v42 }
 0xe16   : > { %v2748_v45 = vsel %vm2277_vm10, %v2747_v44, 0.0 }
 0xe17   : > { %3673 = vmatpush3.bf16.msra.mxu0 %v3672_v54 }
 0xe18   : > { %3674 = vmatprep.subr.bf16.mxu0 %v3851_v49 }
 0xe19   : > { %2749 = vadd.xlane.f32.xlu0 %v2748_v45 }
 0xe1b   : > { %3677 = vmatpush3.bf16.msk.msra.mxu0 %vm3676_vm13, %v3675_v57 }
 0xea2   : > { %v2744_v43 = vpop.xlane.xlu0 %2743 }
 0xea3   : > { %v2746_v58 = vmul.f32 0.015873017, %v2744_v43 }
 0xea5   : > { %v2752_v60 = vmul.f32 %v2746_v58, %v2746_v58  ;;  %v2754_v0 = vsub.f32 %v2739_v40, %v2746_v58 }
 0xea6   : > { %v2750_v59 = vpop.xlane.xlu0 %2749 }
 0xea7   : > { %v2751_v61 = vmul.f32 0.015873017, %v2750_v59 }
 0xea9   : > { %v2753_v62 = vsub.f32 %v2751_v61, %v2752_v60 }
 0xeab   : > { %v2755_v63 = vadd.f32 1e-05, %v2753_v62 }
 0xead   : > { %3789 = vrsqrt.f32 %v2755_v63 }
 0xeb7   : > { %v3790_v1 = vpop.eup %3789 }
 0xeb8   : > { %v2757_v3 = vmul.f32 %v3790_v1, %v2754_v0 }
 0xeba   : > { %v2764_v5 = vmul.f32 %v3124_v2, %v2757_v3 }
 0xebc   : > { %v2771_v6 = vadd.f32 %v3125_v4, %v2764_v5 }
 0xebe   : > { %3537 = vmatmul.mubr.msk.f32.vlgmr.msra.gmra.mrb[0].mxu0 %vm2277_vm10, %v2771_v6 }
 0xf91   : > { %v2859_v8 = vpop.f32.mrb[0].mxu0 }
 0xf92   : > { %v2860_v9 = vadd.f32 %v3126_v7, %v2859_v8  ;;  %v3538_v10 = vpop.f32.mrb[1].mxu0 }
 0xf94   : > { %2863 = vst [vmem:[#allocation5] sm:$0xff] %v2860_v9 }
 0xf95 PF: > { %p3682_p12 = scmp.eq.s32.totalorder %s3952_s21, 3  ;;  %s3855_s25 = smov [#allocation5]  }
 0xf96   : > { %s2871_s20 = sshll.u32 %s3855_s25, 4  ;;  %s2872_s20 = int_to_ptr.vmem [resolvable:$true] %s2871_s20 }
 0xf97   : > { %s3791_s19 = scalar_lea.vmem %s2872_s20, 128  ;;  %p3798_p2 = scmp.lt.s32.totalorder %s2872_s20, %s2872_s20 }
 0xf98   : > { %p3792_p13 = scmp.ne.s32.totalorder %s2872_s20, %s3791_s19  ;;  %p3799_p3 = scmp.lt.s32.totalorder %s3791_s19, %s3791_s19 }
 0xf9a   : > { %p3793_p0 = pnand %p3792_p13, %p3682_p12  ;;  %p3800_p4 = por %p3799_p3, %p3798_p2 }
 0xf9c   : > { %p3794_p1 = pneg %p3793_p0 }
 0xf9e   : > { %p3801_p5 = pnand %p3800_p4, %p3794_p1 }
 0xfa0   : > { %3804 = shalt.err (!%p3801_p5)
}
 0xfa1   : > { %s3805_s16 = scalar_lea.hbm %s4601_s15, 128 }
 0xfa2   : > { %p3806_p6 = scmp.ne.s32.totalorder %s4601_s15, %s3805_s16  ;;  %p3811_p9 = scmp.lt.u32.totalorder %s3805_s16, %s4601_s15 }
 0xfa4   : > { %p3807_p7 = pnand %p3806_p6, %p3682_p12 }
 0xfa6   : > { %p3808_p8 = pneg %p3807_p7 }
 0xfa8   : > { %p3813_p10 = pnand %p3811_p9, %p3808_p8 }
 0xfaa   : > { %3816 = shalt.err (!%p3813_p10)
}
 0xfab   : > { %3679 = dma.vmem_to_hbm [thread:$0]  (%p3682_p12), %s2872_s20, 128, %s4601_s15, [#allocation6]  }
 0xfac   : > { %3830 = dma.done.wait (%p3682_p12), [#allocation6], 128  }
 0xfad   : > { %3832 = vsyncadd (%p3682_p12), [#allocation6], 4294967168 }
 0xfae PF: > { %s4612_s20 = sld [smem:[#allocation9_spill]]  ;;  %s4613_s18 = sld [smem:[#allocation8_spill]] }
 0xfaf   : > { %s4614_s19 = sld [smem:[#allocation10_spill]] }
 0xfb4   : > { %p23_p11 = scmp.ge.s32.totalorder %s4612_s20, 6  }
 0xfb6   :  { %25 = sbr.rel (!%p23_p11) target bundleno = 4 (0x4), region = 167 }
 0xfbd   :  { %2884 = vsyncpa [#allocation6], 1 }
 0xfbe   :  { %2886 = vsyncpa [#allocation6 + $0x1], 1 }

</bundles_post_ra>
